<compile_context>
chip_gen: v6e
topology: v6e:2x2x1
jax: 0.10.0
libtpu: 0.0.40
codegen_flags: <defaults>
</compile_context>

<pallas_src>
import functools

import jax
import jax.numpy as jnp
from jax import lax
from jax.experimental import pallas as pl
from jax.experimental.pallas import tpu as pltpu  # noqa: F401  (TPU backend)

HEBBIAN_LR = 0.01
HEBBIAN_DECAY = 0.99


def flipflop_hebbian_kernel(x_ref, h0_ref, w_ref, b_ref, wo_bd_ref, bo_ref,
                            out_ref, hout_ref, *, seq_length, hidden_size):
    H = hidden_size
    x = x_ref[...]                                   # (B, I)    constant in time
    xm = jnp.mean(x, axis=0, keepdims=True)          # (1, I)    constant in time
    b = b_ref[...]                                   # (1, 2H)   [bjx+bjh | bkx+bkh]
    w = w_ref[...]                                   # (2H, I+H) [[Wjx|Wjh],[Wkx|Wkh]]
    tr = jnp.zeros_like(w)                           # fused Hebbian trace
    h = h0_ref[...]                                  # (B, H)

    hs = []
    # Fully unrolled static time loop: the recurrence is serially dependent
    # (weights + hidden feed the next step), so only chain-shortening and
    # cross-step scheduler visibility help here.
    for _ in range(seq_length):
        hm = jnp.mean(h, axis=0, keepdims=True)      # (1, H)
        xh = jnp.concatenate([x, h], axis=1)         # (B, I+H)
        # one fused matmul for both gates (J = rows 0:H, K = rows H:2H)
        pre = lax.dot_general(xh, w, (((1,), (1,)), ((), ())),
                              preferred_element_type=jnp.float32) + b
        g = jax.nn.sigmoid(pre)                      # (B, 2H)
        j = g[:, :H]
        k = g[:, H:]
        # one fused rank-1 outer product for all four Hebbian traces
        gm = jnp.mean(g, axis=0, keepdims=True)      # (1, 2H)
        xhm = jnp.concatenate([xm, hm], axis=1)      # (1, I+H)
        outer = lax.dot_general(gm, xhm, (((0,), (0,)), ((), ())),
                                preferred_element_type=jnp.float32)  # (2H, I+H)
        tr = (tr + HEBBIAN_LR * outer) * HEBBIAN_DECAY
        w = w + tr
        h = j * (1.0 - h) + (1.0 - k) * h
        hs.append(h)

    # Deferred output projection: one matmul against block-diagonal
    # kron(I_S, Wo^T) produces a lane-dense (B, S*O) slab, stored once.
    h_cat = jnp.concatenate(hs, axis=1)              # (B, S*H)
    out = lax.dot_general(h_cat, wo_bd_ref[...], (((1,), (0,)), ((), ())),
                          preferred_element_type=jnp.float32) + bo_ref[...]
    out_ref[...] = out.astype(out_ref.dtype)
    hout_ref[...] = h.astype(hout_ref.dtype)


def signal_flipflop_layer_hebbian(x, hidden, params, seq_length):
    """x: (B, input_size), hidden: (B, hidden_size) or None."""
    B, I = x.shape
    H = params["wjh"].shape[0]
    O = params["wo"].shape[0]
    dtype = x.dtype
    if hidden is None:
        hidden = jnp.zeros((B, H), dtype=dtype)

    # One-time layout plumbing (loop-invariant), done outside the kernel.
    w_cat = jnp.concatenate(
        [jnp.concatenate([params["wjx"], params["wjh"]], axis=1),
         jnp.concatenate([params["wkx"], params["wkh"]], axis=1)],
        axis=0)                                                        # (2H, I+H)
    b_cat = jnp.concatenate([params["bjx"] + params["bjh"],
                             params["bkx"] + params["bkh"]]).reshape(1, 2 * H)
    wo_bd = jnp.kron(jnp.eye(seq_length, dtype=dtype), params["wo"].T)  # (S*H, S*O)
    bo_t = jnp.tile(params["bo"], seq_length).reshape(1, seq_length * O)

    kernel = functools.partial(flipflop_hebbian_kernel,
                               seq_length=seq_length, hidden_size=H)
    # No grid / no BlockSpecs: whole arrays are VMEM resident (all tiny).
    out_flat, h_final = pl.pallas_call(
        kernel,
        out_shape=(jax.ShapeDtypeStruct((B, seq_length * O), dtype),
                   jax.ShapeDtypeStruct((B, H), dtype)),
    )(x, hidden, w_cat, b_cat, wo_bd, bo_t)

    # (B, S*O) -> (B, S, O): free row-major reshape, no transpose.
    return out_flat.reshape(B, seq_length, O), h_final


def reference_forward(x, hidden, params, seq_length,
                      lr=HEBBIAN_LR, decay=HEBBIAN_DECAY):
    """Pure-JAX reference mirroring the PyTorch module exactly."""
    wjx, wjh = params["wjx"], params["wjh"]
    wkx, wkh = params["wkx"], params["wkh"]
    bjx, bjh = params["bjx"], params["bjh"]
    bkx, bkh = params["bkx"], params["bkh"]
    wo, bo = params["wo"], params["bo"]
    tjx = jnp.zeros_like(wjx)
    tjh = jnp.zeros_like(wjh)
    tkx = jnp.zeros_like(wkx)
    tkh = jnp.zeros_like(wkh)
    h = hidden
    xm = x.mean(0)
    outs = []
    for _ in range(seq_length):
        hm = h.mean(0)
        j = jax.nn.sigmoid(x @ wjx.T + bjx + h @ wjh.T + bjh)
        tjx = (tjx + lr * jnp.outer(j.mean(0), xm)) * decay
        tjh = (tjh + lr * jnp.outer(j.mean(0), hm)) * decay
        wjx = wjx + tjx
        wjh = wjh + tjh
        k = jax.nn.sigmoid(x @ wkx.T + bkx + h @ wkh.T + bkh)
        tkx = (tkx + lr * jnp.outer(k.mean(0), xm)) * decay
        tkh = (tkh + lr * jnp.outer(k.mean(0), hm)) * decay
        wkx = wkx + tkx
        wkh = wkh + tkh
        new_h = j * (1.0 - h) + (1.0 - k) * h
        outs.append(new_h @ wo.T + bo)
        h = new_h
    return jnp.stack(outs, axis=1), h


if __name__ == "__main__":
    # Small shapes consistent with the module's forward:
    #   x: (batch, input_size) ; hidden: (batch, hidden_size)
    B, I, H, O, S = 8, 16, 32, 16, 8
    key = jax.random.PRNGKey(0)
    ks = jax.random.split(key, 11)

    params = {
        "wjx": 0.1 * jax.random.normal(ks[0], (H, I), jnp.float32),
        "bjx": 0.1 * jax.random.normal(ks[1], (H,), jnp.float32),
        "wjh": 0.1 * jax.random.normal(ks[2], (H, H), jnp.float32),
        "bjh": 0.1 * jax.random.normal(ks[3], (H,), jnp.float32),
        "wkx": 0.1 * jax.random.normal(ks[4], (H, I), jnp.float32),
        "bkx": 0.1 * jax.random.normal(ks[5], (H,), jnp.float32),
        "wkh": 0.1 * jax.random.normal(ks[6], (H, H), jnp.float32),
        "bkh": 0.1 * jax.random.normal(ks[7], (H,), jnp.float32),
        "wo": 0.1 * jax.random.normal(ks[8], (O, H), jnp.float32),
        "bo": 0.1 * jax.random.normal(ks[9], (O,), jnp.float32),
    }
    x = jax.random.normal(ks[10], (B, I), jnp.float32)
    h0 = jnp.zeros((B, H), jnp.float32)   # module default when hidden is None

    fwd = jax.jit(signal_flipflop_layer_hebbian, static_argnames="seq_length")
    outputs, h_final = fwd(x, h0, params, seq_length=S)
    outputs, h_final = jax.block_until_ready((outputs, h_final))

    ref_out, ref_h = reference_forward(x, h0, params, S)
    assert outputs.shape == (B, S, O) and h_final.shape == (B, H)
    # Tolerance leaves room for f32 accumulation-order differences introduced
    # by the fused / deferred matmuls (the math is otherwise identical).
    assert jnp.allclose(outputs, ref_out, rtol=1e-4, atol=1e-4), \
        float(jnp.max(jnp.abs(outputs - ref_out)))
    assert jnp.allclose(h_final, ref_h, rtol=1e-4, atol=1e-4), \
        float(jnp.max(jnp.abs(h_final - ref_h)))
    print("KERNEL_OK")
</pallas_src>

<mosaic_0001>
module attributes {stable_mosaic.version = 11 : i64} {
  func.func @flipflop_hebbian_kernel(%arg0: memref<8x16xf32, #tpu.memory_space<vmem>>, %arg1: memref<8x32xf32, #tpu.memory_space<vmem>>, %arg2: memref<64x48xf32, #tpu.memory_space<vmem>>, %arg3: memref<1x64xf32, #tpu.memory_space<vmem>>, %arg4: memref<256x128xf32, #tpu.memory_space<vmem>>, %arg5: memref<1x128xf32, #tpu.memory_space<vmem>>, %arg6: memref<8x128xf32, #tpu.memory_space<vmem>>, %arg7: memref<8x32xf32, #tpu.memory_space<vmem>>) attributes {dimension_semantics = [], scalar_prefetch = 0 : i64, scratch_operands = 0 : i64, tpu.core_type = #tpu.core_type<tc>} {
    %c0 = arith.constant 0 : index
    %c0_0 = arith.constant 0 : index
    %0 = vector.load %arg0[%c0, %c0_0] : memref<8x16xf32, #tpu.memory_space<vmem>>, vector<8x16xf32>
    %cst = arith.constant dense<0.000000e+00> : vector<16xf32>
    %1 = vector.multi_reduction <add>, %0, %cst [0] : vector<8x16xf32> to vector<16xf32>
    %2 = vector.shape_cast %1 : vector<16xf32> to vector<1x16xf32>
    %cst_1 = arith.constant 8.000000e+00 : f32
    %3 = vector.broadcast %cst_1 : f32 to vector<1x16xf32>
    %4 = arith.divf %2, %3 : vector<1x16xf32>
    %c0_2 = arith.constant 0 : index
    %c0_3 = arith.constant 0 : index
    %5 = vector.load %arg3[%c0_2, %c0_3] : memref<1x64xf32, #tpu.memory_space<vmem>>, vector<1x64xf32>
    %c0_4 = arith.constant 0 : index
    %c0_5 = arith.constant 0 : index
    %6 = vector.load %arg2[%c0_4, %c0_5] : memref<64x48xf32, #tpu.memory_space<vmem>>, vector<64x48xf32>
    %cst_6 = arith.constant 0.000000e+00 : f32
    %7 = vector.broadcast %cst_6 : f32 to vector<64x48xf32>
    %c0_7 = arith.constant 0 : index
    %c0_8 = arith.constant 0 : index
    %8 = vector.load %arg1[%c0_7, %c0_8] : memref<8x32xf32, #tpu.memory_space<vmem>>, vector<8x32xf32>
    %cst_9 = arith.constant dense<0.000000e+00> : vector<32xf32>
    %9 = vector.multi_reduction <add>, %8, %cst_9 [0] : vector<8x32xf32> to vector<32xf32>
    %10 = vector.shape_cast %9 : vector<32xf32> to vector<1x32xf32>
    %cst_10 = arith.constant 8.000000e+00 : f32
    %11 = vector.broadcast %cst_10 : f32 to vector<1x32xf32>
    %12 = arith.divf %10, %11 : vector<1x32xf32>
    %13 = tpu.concatenate %0, %8 in 1 : vector<8x16xf32>, vector<8x32xf32> -> vector<8x48xf32>
    %cst_11 = arith.constant dense<0.000000e+00> : vector<8x64xf32>
    %14 = tpu.matmul %13, %6, %cst_11 {dimension_numbers = #tpu.dot_dimension_numbers<[1], [1], [0], [0], [0, 0, 1, 0], [], []>} : vector<8x48xf32>, vector<64x48xf32>, vector<8x64xf32> -> vector<8x64xf32>
    %15 = vector.broadcast %5 : vector<1x64xf32> to vector<8x64xf32>
    %16 = arith.addf %14, %15 : vector<8x64xf32>
    %17 = arith.negf %16 : vector<8x64xf32>
    %18 = math.exp %17 : vector<8x64xf32>
    %cst_12 = arith.constant 1.000000e+00 : f32
    %19 = vector.broadcast %cst_12 : f32 to vector<8x64xf32>
    %20 = arith.addf %19, %18 : vector<8x64xf32>
    %21 = arith.divf %19, %20 : vector<8x64xf32>
    %22 = vector.extract_strided_slice %21 {offsets = [0, 0], sizes = [8, 32], strides = [1, 1]} : vector<8x64xf32> to vector<8x32xf32>
    %23 = vector.extract_strided_slice %21 {offsets = [0, 32], sizes = [8, 32], strides = [1, 1]} : vector<8x64xf32> to vector<8x32xf32>
    %cst_13 = arith.constant dense<0.000000e+00> : vector<64xf32>
    %24 = vector.multi_reduction <add>, %21, %cst_13 [0] : vector<8x64xf32> to vector<64xf32>
    %25 = vector.shape_cast %24 : vector<64xf32> to vector<1x64xf32>
    %cst_14 = arith.constant 8.000000e+00 : f32
    %26 = vector.broadcast %cst_14 : f32 to vector<1x64xf32>
    %27 = arith.divf %25, %26 : vector<1x64xf32>
    %28 = tpu.concatenate %4, %12 in 1 : vector<1x16xf32>, vector<1x32xf32> -> vector<1x48xf32>
    %cst_15 = arith.constant dense<0.000000e+00> : vector<64x48xf32>
    %29 = tpu.matmul %27, %28, %cst_15 {dimension_numbers = #tpu.dot_dimension_numbers<[0], [0], [1], [1], [0, 1, 1, 1], [], []>} : vector<1x64xf32>, vector<1x48xf32>, vector<64x48xf32> -> vector<64x48xf32>
    %cst_16 = arith.constant 0.00999999977 : f32
    %30 = vector.broadcast %cst_16 : f32 to vector<64x48xf32>
    %31 = arith.mulf %30, %29 : vector<64x48xf32>
    %32 = arith.addf %7, %31 : vector<64x48xf32>
    %cst_17 = arith.constant 9.900000e-01 : f32
    %33 = vector.broadcast %cst_17 : f32 to vector<64x48xf32>
    %34 = arith.mulf %32, %33 : vector<64x48xf32>
    %35 = arith.addf %6, %34 : vector<64x48xf32>
    %cst_18 = arith.constant 1.000000e+00 : f32
    %36 = vector.broadcast %cst_18 : f32 to vector<8x32xf32>
    %37 = arith.subf %36, %8 : vector<8x32xf32>
    %38 = arith.mulf %22, %37 : vector<8x32xf32>
    %cst_19 = arith.constant 1.000000e+00 : f32
    %39 = vector.broadcast %cst_19 : f32 to vector<8x32xf32>
    %40 = arith.subf %39, %23 : vector<8x32xf32>
    %41 = arith.mulf %40, %8 : vector<8x32xf32>
    %42 = arith.addf %38, %41 : vector<8x32xf32>
    %cst_20 = arith.constant dense<0.000000e+00> : vector<32xf32>
    %43 = vector.multi_reduction <add>, %42, %cst_20 [0] : vector<8x32xf32> to vector<32xf32>
    %44 = vector.shape_cast %43 : vector<32xf32> to vector<1x32xf32>
    %cst_21 = arith.constant 8.000000e+00 : f32
    %45 = vector.broadcast %cst_21 : f32 to vector<1x32xf32>
    %46 = arith.divf %44, %45 : vector<1x32xf32>
    %47 = tpu.concatenate %0, %42 in 1 : vector<8x16xf32>, vector<8x32xf32> -> vector<8x48xf32>
    %cst_22 = arith.constant dense<0.000000e+00> : vector<8x64xf32>
    %48 = tpu.matmul %47, %35, %cst_22 {dimension_numbers = #tpu.dot_dimension_numbers<[1], [1], [0], [0], [0, 0, 1, 0], [], []>} : vector<8x48xf32>, vector<64x48xf32>, vector<8x64xf32> -> vector<8x64xf32>
    %49 = vector.broadcast %5 : vector<1x64xf32> to vector<8x64xf32>
    %50 = arith.addf %48, %49 : vector<8x64xf32>
    %51 = arith.negf %50 : vector<8x64xf32>
    %52 = math.exp %51 : vector<8x64xf32>
    %cst_23 = arith.constant 1.000000e+00 : f32
    %53 = vector.broadcast %cst_23 : f32 to vector<8x64xf32>
    %54 = arith.addf %53, %52 : vector<8x64xf32>
    %55 = arith.divf %53, %54 : vector<8x64xf32>
    %56 = vector.extract_strided_slice %55 {offsets = [0, 0], sizes = [8, 32], strides = [1, 1]} : vector<8x64xf32> to vector<8x32xf32>
    %57 = vector.extract_strided_slice %55 {offsets = [0, 32], sizes = [8, 32], strides = [1, 1]} : vector<8x64xf32> to vector<8x32xf32>
    %cst_24 = arith.constant dense<0.000000e+00> : vector<64xf32>
    %58 = vector.multi_reduction <add>, %55, %cst_24 [0] : vector<8x64xf32> to vector<64xf32>
    %59 = vector.shape_cast %58 : vector<64xf32> to vector<1x64xf32>
    %cst_25 = arith.constant 8.000000e+00 : f32
    %60 = vector.broadcast %cst_25 : f32 to vector<1x64xf32>
    %61 = arith.divf %59, %60 : vector<1x64xf32>
    %62 = tpu.concatenate %4, %46 in 1 : vector<1x16xf32>, vector<1x32xf32> -> vector<1x48xf32>
    %cst_26 = arith.constant dense<0.000000e+00> : vector<64x48xf32>
    %63 = tpu.matmul %61, %62, %cst_26 {dimension_numbers = #tpu.dot_dimension_numbers<[0], [0], [1], [1], [0, 1, 1, 1], [], []>} : vector<1x64xf32>, vector<1x48xf32>, vector<64x48xf32> -> vector<64x48xf32>
    %cst_27 = arith.constant 0.00999999977 : f32
    %64 = vector.broadcast %cst_27 : f32 to vector<64x48xf32>
    %65 = arith.mulf %64, %63 : vector<64x48xf32>
    %66 = arith.addf %34, %65 : vector<64x48xf32>
    %cst_28 = arith.constant 9.900000e-01 : f32
    %67 = vector.broadcast %cst_28 : f32 to vector<64x48xf32>
    %68 = arith.mulf %66, %67 : vector<64x48xf32>
    %69 = arith.addf %35, %68 : vector<64x48xf32>
    %cst_29 = arith.constant 1.000000e+00 : f32
    %70 = vector.broadcast %cst_29 : f32 to vector<8x32xf32>
    %71 = arith.subf %70, %42 : vector<8x32xf32>
    %72 = arith.mulf %56, %71 : vector<8x32xf32>
    %cst_30 = arith.constant 1.000000e+00 : f32
    %73 = vector.broadcast %cst_30 : f32 to vector<8x32xf32>
    %74 = arith.subf %73, %57 : vector<8x32xf32>
    %75 = arith.mulf %74, %42 : vector<8x32xf32>
    %76 = arith.addf %72, %75 : vector<8x32xf32>
    %cst_31 = arith.constant dense<0.000000e+00> : vector<32xf32>
    %77 = vector.multi_reduction <add>, %76, %cst_31 [0] : vector<8x32xf32> to vector<32xf32>
    %78 = vector.shape_cast %77 : vector<32xf32> to vector<1x32xf32>
    %cst_32 = arith.constant 8.000000e+00 : f32
    %79 = vector.broadcast %cst_32 : f32 to vector<1x32xf32>
    %80 = arith.divf %78, %79 : vector<1x32xf32>
    %81 = tpu.concatenate %0, %76 in 1 : vector<8x16xf32>, vector<8x32xf32> -> vector<8x48xf32>
    %cst_33 = arith.constant dense<0.000000e+00> : vector<8x64xf32>
    %82 = tpu.matmul %81, %69, %cst_33 {dimension_numbers = #tpu.dot_dimension_numbers<[1], [1], [0], [0], [0, 0, 1, 0], [], []>} : vector<8x48xf32>, vector<64x48xf32>, vector<8x64xf32> -> vector<8x64xf32>
    %83 = vector.broadcast %5 : vector<1x64xf32> to vector<8x64xf32>
    %84 = arith.addf %82, %83 : vector<8x64xf32>
    %85 = arith.negf %84 : vector<8x64xf32>
    %86 = math.exp %85 : vector<8x64xf32>
    %cst_34 = arith.constant 1.000000e+00 : f32
    %87 = vector.broadcast %cst_34 : f32 to vector<8x64xf32>
    %88 = arith.addf %87, %86 : vector<8x64xf32>
    %89 = arith.divf %87, %88 : vector<8x64xf32>
    %90 = vector.extract_strided_slice %89 {offsets = [0, 0], sizes = [8, 32], strides = [1, 1]} : vector<8x64xf32> to vector<8x32xf32>
    %91 = vector.extract_strided_slice %89 {offsets = [0, 32], sizes = [8, 32], strides = [1, 1]} : vector<8x64xf32> to vector<8x32xf32>
    %cst_35 = arith.constant dense<0.000000e+00> : vector<64xf32>
    %92 = vector.multi_reduction <add>, %89, %cst_35 [0] : vector<8x64xf32> to vector<64xf32>
    %93 = vector.shape_cast %92 : vector<64xf32> to vector<1x64xf32>
    %cst_36 = arith.constant 8.000000e+00 : f32
    %94 = vector.broadcast %cst_36 : f32 to vector<1x64xf32>
    %95 = arith.divf %93, %94 : vector<1x64xf32>
    %96 = tpu.concatenate %4, %80 in 1 : vector<1x16xf32>, vector<1x32xf32> -> vector<1x48xf32>
    %cst_37 = arith.constant dense<0.000000e+00> : vector<64x48xf32>
    %97 = tpu.matmul %95, %96, %cst_37 {dimension_numbers = #tpu.dot_dimension_numbers<[0], [0], [1], [1], [0, 1, 1, 1], [], []>} : vector<1x64xf32>, vector<1x48xf32>, vector<64x48xf32> -> vector<64x48xf32>
    %cst_38 = arith.constant 0.00999999977 : f32
    %98 = vector.broadcast %cst_38 : f32 to vector<64x48xf32>
    %99 = arith.mulf %98, %97 : vector<64x48xf32>
    %100 = arith.addf %68, %99 : vector<64x48xf32>
    %cst_39 = arith.constant 9.900000e-01 : f32
    %101 = vector.broadcast %cst_39 : f32 to vector<64x48xf32>
    %102 = arith.mulf %100, %101 : vector<64x48xf32>
    %103 = arith.addf %69, %102 : vector<64x48xf32>
    %cst_40 = arith.constant 1.000000e+00 : f32
    %104 = vector.broadcast %cst_40 : f32 to vector<8x32xf32>
    %105 = arith.subf %104, %76 : vector<8x32xf32>
    %106 = arith.mulf %90, %105 : vector<8x32xf32>
    %cst_41 = arith.constant 1.000000e+00 : f32
    %107 = vector.broadcast %cst_41 : f32 to vector<8x32xf32>
    %108 = arith.subf %107, %91 : vector<8x32xf32>
    %109 = arith.mulf %108, %76 : vector<8x32xf32>
    %110 = arith.addf %106, %109 : vector<8x32xf32>
    %cst_42 = arith.constant dense<0.000000e+00> : vector<32xf32>
    %111 = vector.multi_reduction <add>, %110, %cst_42 [0] : vector<8x32xf32> to vector<32xf32>
    %112 = vector.shape_cast %111 : vector<32xf32> to vector<1x32xf32>
    %cst_43 = arith.constant 8.000000e+00 : f32
    %113 = vector.broadcast %cst_43 : f32 to vector<1x32xf32>
    %114 = arith.divf %112, %113 : vector<1x32xf32>
    %115 = tpu.concatenate %0, %110 in 1 : vector<8x16xf32>, vector<8x32xf32> -> vector<8x48xf32>
    %cst_44 = arith.constant dense<0.000000e+00> : vector<8x64xf32>
    %116 = tpu.matmul %115, %103, %cst_44 {dimension_numbers = #tpu.dot_dimension_numbers<[1], [1], [0], [0], [0, 0, 1, 0], [], []>} : vector<8x48xf32>, vector<64x48xf32>, vector<8x64xf32> -> vector<8x64xf32>
    %117 = vector.broadcast %5 : vector<1x64xf32> to vector<8x64xf32>
    %118 = arith.addf %116, %117 : vector<8x64xf32>
    %119 = arith.negf %118 : vector<8x64xf32>
    %120 = math.exp %119 : vector<8x64xf32>
    %cst_45 = arith.constant 1.000000e+00 : f32
    %121 = vector.broadcast %cst_45 : f32 to vector<8x64xf32>
    %122 = arith.addf %121, %120 : vector<8x64xf32>
    %123 = arith.divf %121, %122 : vector<8x64xf32>
    %124 = vector.extract_strided_slice %123 {offsets = [0, 0], sizes = [8, 32], strides = [1, 1]} : vector<8x64xf32> to vector<8x32xf32>
    %125 = vector.extract_strided_slice %123 {offsets = [0, 32], sizes = [8, 32], strides = [1, 1]} : vector<8x64xf32> to vector<8x32xf32>
    %cst_46 = arith.constant dense<0.000000e+00> : vector<64xf32>
    %126 = vector.multi_reduction <add>, %123, %cst_46 [0] : vector<8x64xf32> to vector<64xf32>
    %127 = vector.shape_cast %126 : vector<64xf32> to vector<1x64xf32>
    %cst_47 = arith.constant 8.000000e+00 : f32
    %128 = vector.broadcast %cst_47 : f32 to vector<1x64xf32>
    %129 = arith.divf %127, %128 : vector<1x64xf32>
    %130 = tpu.concatenate %4, %114 in 1 : vector<1x16xf32>, vector<1x32xf32> -> vector<1x48xf32>
    %cst_48 = arith.constant dense<0.000000e+00> : vector<64x48xf32>
    %131 = tpu.matmul %129, %130, %cst_48 {dimension_numbers = #tpu.dot_dimension_numbers<[0], [0], [1], [1], [0, 1, 1, 1], [], []>} : vector<1x64xf32>, vector<1x48xf32>, vector<64x48xf32> -> vector<64x48xf32>
    %cst_49 = arith.constant 0.00999999977 : f32
    %132 = vector.broadcast %cst_49 : f32 to vector<64x48xf32>
    %133 = arith.mulf %132, %131 : vector<64x48xf32>
    %134 = arith.addf %102, %133 : vector<64x48xf32>
    %cst_50 = arith.constant 9.900000e-01 : f32
    %135 = vector.broadcast %cst_50 : f32 to vector<64x48xf32>
    %136 = arith.mulf %134, %135 : vector<64x48xf32>
    %137 = arith.addf %103, %136 : vector<64x48xf32>
    %cst_51 = arith.constant 1.000000e+00 : f32
    %138 = vector.broadcast %cst_51 : f32 to vector<8x32xf32>
    %139 = arith.subf %138, %110 : vector<8x32xf32>
    %140 = arith.mulf %124, %139 : vector<8x32xf32>
    %cst_52 = arith.constant 1.000000e+00 : f32
    %141 = vector.broadcast %cst_52 : f32 to vector<8x32xf32>
    %142 = arith.subf %141, %125 : vector<8x32xf32>
    %143 = arith.mulf %142, %110 : vector<8x32xf32>
    %144 = arith.addf %140, %143 : vector<8x32xf32>
    %cst_53 = arith.constant dense<0.000000e+00> : vector<32xf32>
    %145 = vector.multi_reduction <add>, %144, %cst_53 [0] : vector<8x32xf32> to vector<32xf32>
    %146 = vector.shape_cast %145 : vector<32xf32> to vector<1x32xf32>
    %cst_54 = arith.constant 8.000000e+00 : f32
    %147 = vector.broadcast %cst_54 : f32 to vector<1x32xf32>
    %148 = arith.divf %146, %147 : vector<1x32xf32>
    %149 = tpu.concatenate %0, %144 in 1 : vector<8x16xf32>, vector<8x32xf32> -> vector<8x48xf32>
    %cst_55 = arith.constant dense<0.000000e+00> : vector<8x64xf32>
    %150 = tpu.matmul %149, %137, %cst_55 {dimension_numbers = #tpu.dot_dimension_numbers<[1], [1], [0], [0], [0, 0, 1, 0], [], []>} : vector<8x48xf32>, vector<64x48xf32>, vector<8x64xf32> -> vector<8x64xf32>
    %151 = vector.broadcast %5 : vector<1x64xf32> to vector<8x64xf32>
    %152 = arith.addf %150, %151 : vector<8x64xf32>
    %153 = arith.negf %152 : vector<8x64xf32>
    %154 = math.exp %153 : vector<8x64xf32>
    %cst_56 = arith.constant 1.000000e+00 : f32
    %155 = vector.broadcast %cst_56 : f32 to vector<8x64xf32>
    %156 = arith.addf %155, %154 : vector<8x64xf32>
    %157 = arith.divf %155, %156 : vector<8x64xf32>
    %158 = vector.extract_strided_slice %157 {offsets = [0, 0], sizes = [8, 32], strides = [1, 1]} : vector<8x64xf32> to vector<8x32xf32>
    %159 = vector.extract_strided_slice %157 {offsets = [0, 32], sizes = [8, 32], strides = [1, 1]} : vector<8x64xf32> to vector<8x32xf32>
    %cst_57 = arith.constant dense<0.000000e+00> : vector<64xf32>
    %160 = vector.multi_reduction <add>, %157, %cst_57 [0] : vector<8x64xf32> to vector<64xf32>
    %161 = vector.shape_cast %160 : vector<64xf32> to vector<1x64xf32>
    %cst_58 = arith.constant 8.000000e+00 : f32
    %162 = vector.broadcast %cst_58 : f32 to vector<1x64xf32>
    %163 = arith.divf %161, %162 : vector<1x64xf32>
    %164 = tpu.concatenate %4, %148 in 1 : vector<1x16xf32>, vector<1x32xf32> -> vector<1x48xf32>
    %cst_59 = arith.constant dense<0.000000e+00> : vector<64x48xf32>
    %165 = tpu.matmul %163, %164, %cst_59 {dimension_numbers = #tpu.dot_dimension_numbers<[0], [0], [1], [1], [0, 1, 1, 1], [], []>} : vector<1x64xf32>, vector<1x48xf32>, vector<64x48xf32> -> vector<64x48xf32>
    %cst_60 = arith.constant 0.00999999977 : f32
    %166 = vector.broadcast %cst_60 : f32 to vector<64x48xf32>
    %167 = arith.mulf %166, %165 : vector<64x48xf32>
    %168 = arith.addf %136, %167 : vector<64x48xf32>
    %cst_61 = arith.constant 9.900000e-01 : f32
    %169 = vector.broadcast %cst_61 : f32 to vector<64x48xf32>
    %170 = arith.mulf %168, %169 : vector<64x48xf32>
    %171 = arith.addf %137, %170 : vector<64x48xf32>
    %cst_62 = arith.constant 1.000000e+00 : f32
    %172 = vector.broadcast %cst_62 : f32 to vector<8x32xf32>
    %173 = arith.subf %172, %144 : vector<8x32xf32>
    %174 = arith.mulf %158, %173 : vector<8x32xf32>
    %cst_63 = arith.constant 1.000000e+00 : f32
    %175 = vector.broadcast %cst_63 : f32 to vector<8x32xf32>
    %176 = arith.subf %175, %159 : vector<8x32xf32>
    %177 = arith.mulf %176, %144 : vector<8x32xf32>
    %178 = arith.addf %174, %177 : vector<8x32xf32>
    %cst_64 = arith.constant dense<0.000000e+00> : vector<32xf32>
    %179 = vector.multi_reduction <add>, %178, %cst_64 [0] : vector<8x32xf32> to vector<32xf32>
    %180 = vector.shape_cast %179 : vector<32xf32> to vector<1x32xf32>
    %cst_65 = arith.constant 8.000000e+00 : f32
    %181 = vector.broadcast %cst_65 : f32 to vector<1x32xf32>
    %182 = arith.divf %180, %181 : vector<1x32xf32>
    %183 = tpu.concatenate %0, %178 in 1 : vector<8x16xf32>, vector<8x32xf32> -> vector<8x48xf32>
    %cst_66 = arith.constant dense<0.000000e+00> : vector<8x64xf32>
    %184 = tpu.matmul %183, %171, %cst_66 {dimension_numbers = #tpu.dot_dimension_numbers<[1], [1], [0], [0], [0, 0, 1, 0], [], []>} : vector<8x48xf32>, vector<64x48xf32>, vector<8x64xf32> -> vector<8x64xf32>
    %185 = vector.broadcast %5 : vector<1x64xf32> to vector<8x64xf32>
    %186 = arith.addf %184, %185 : vector<8x64xf32>
    %187 = arith.negf %186 : vector<8x64xf32>
    %188 = math.exp %187 : vector<8x64xf32>
    %cst_67 = arith.constant 1.000000e+00 : f32
    %189 = vector.broadcast %cst_67 : f32 to vector<8x64xf32>
    %190 = arith.addf %189, %188 : vector<8x64xf32>
    %191 = arith.divf %189, %190 : vector<8x64xf32>
    %192 = vector.extract_strided_slice %191 {offsets = [0, 0], sizes = [8, 32], strides = [1, 1]} : vector<8x64xf32> to vector<8x32xf32>
    %193 = vector.extract_strided_slice %191 {offsets = [0, 32], sizes = [8, 32], strides = [1, 1]} : vector<8x64xf32> to vector<8x32xf32>
    %cst_68 = arith.constant dense<0.000000e+00> : vector<64xf32>
    %194 = vector.multi_reduction <add>, %191, %cst_68 [0] : vector<8x64xf32> to vector<64xf32>
    %195 = vector.shape_cast %194 : vector<64xf32> to vector<1x64xf32>
    %cst_69 = arith.constant 8.000000e+00 : f32
    %196 = vector.broadcast %cst_69 : f32 to vector<1x64xf32>
    %197 = arith.divf %195, %196 : vector<1x64xf32>
    %198 = tpu.concatenate %4, %182 in 1 : vector<1x16xf32>, vector<1x32xf32> -> vector<1x48xf32>
    %cst_70 = arith.constant dense<0.000000e+00> : vector<64x48xf32>
    %199 = tpu.matmul %197, %198, %cst_70 {dimension_numbers = #tpu.dot_dimension_numbers<[0], [0], [1], [1], [0, 1, 1, 1], [], []>} : vector<1x64xf32>, vector<1x48xf32>, vector<64x48xf32> -> vector<64x48xf32>
    %cst_71 = arith.constant 0.00999999977 : f32
    %200 = vector.broadcast %cst_71 : f32 to vector<64x48xf32>
    %201 = arith.mulf %200, %199 : vector<64x48xf32>
    %202 = arith.addf %170, %201 : vector<64x48xf32>
    %cst_72 = arith.constant 9.900000e-01 : f32
    %203 = vector.broadcast %cst_72 : f32 to vector<64x48xf32>
    %204 = arith.mulf %202, %203 : vector<64x48xf32>
    %205 = arith.addf %171, %204 : vector<64x48xf32>
    %cst_73 = arith.constant 1.000000e+00 : f32
    %206 = vector.broadcast %cst_73 : f32 to vector<8x32xf32>
    %207 = arith.subf %206, %178 : vector<8x32xf32>
    %208 = arith.mulf %192, %207 : vector<8x32xf32>
    %cst_74 = arith.constant 1.000000e+00 : f32
    %209 = vector.broadcast %cst_74 : f32 to vector<8x32xf32>
    %210 = arith.subf %209, %193 : vector<8x32xf32>
    %211 = arith.mulf %210, %178 : vector<8x32xf32>
    %212 = arith.addf %208, %211 : vector<8x32xf32>
    %cst_75 = arith.constant dense<0.000000e+00> : vector<32xf32>
    %213 = vector.multi_reduction <add>, %212, %cst_75 [0] : vector<8x32xf32> to vector<32xf32>
    %214 = vector.shape_cast %213 : vector<32xf32> to vector<1x32xf32>
    %cst_76 = arith.constant 8.000000e+00 : f32
    %215 = vector.broadcast %cst_76 : f32 to vector<1x32xf32>
    %216 = arith.divf %214, %215 : vector<1x32xf32>
    %217 = tpu.concatenate %0, %212 in 1 : vector<8x16xf32>, vector<8x32xf32> -> vector<8x48xf32>
    %cst_77 = arith.constant dense<0.000000e+00> : vector<8x64xf32>
    %218 = tpu.matmul %217, %205, %cst_77 {dimension_numbers = #tpu.dot_dimension_numbers<[1], [1], [0], [0], [0, 0, 1, 0], [], []>} : vector<8x48xf32>, vector<64x48xf32>, vector<8x64xf32> -> vector<8x64xf32>
    %219 = vector.broadcast %5 : vector<1x64xf32> to vector<8x64xf32>
    %220 = arith.addf %218, %219 : vector<8x64xf32>
    %221 = arith.negf %220 : vector<8x64xf32>
    %222 = math.exp %221 : vector<8x64xf32>
    %cst_78 = arith.constant 1.000000e+00 : f32
    %223 = vector.broadcast %cst_78 : f32 to vector<8x64xf32>
    %224 = arith.addf %223, %222 : vector<8x64xf32>
    %225 = arith.divf %223, %224 : vector<8x64xf32>
    %226 = vector.extract_strided_slice %225 {offsets = [0, 0], sizes = [8, 32], strides = [1, 1]} : vector<8x64xf32> to vector<8x32xf32>
    %227 = vector.extract_strided_slice %225 {offsets = [0, 32], sizes = [8, 32], strides = [1, 1]} : vector<8x64xf32> to vector<8x32xf32>
    %cst_79 = arith.constant dense<0.000000e+00> : vector<64xf32>
    %228 = vector.multi_reduction <add>, %225, %cst_79 [0] : vector<8x64xf32> to vector<64xf32>
    %229 = vector.shape_cast %228 : vector<64xf32> to vector<1x64xf32>
    %cst_80 = arith.constant 8.000000e+00 : f32
    %230 = vector.broadcast %cst_80 : f32 to vector<1x64xf32>
    %231 = arith.divf %229, %230 : vector<1x64xf32>
    %232 = tpu.concatenate %4, %216 in 1 : vector<1x16xf32>, vector<1x32xf32> -> vector<1x48xf32>
    %cst_81 = arith.constant dense<0.000000e+00> : vector<64x48xf32>
    %233 = tpu.matmul %231, %232, %cst_81 {dimension_numbers = #tpu.dot_dimension_numbers<[0], [0], [1], [1], [0, 1, 1, 1], [], []>} : vector<1x64xf32>, vector<1x48xf32>, vector<64x48xf32> -> vector<64x48xf32>
    %cst_82 = arith.constant 0.00999999977 : f32
    %234 = vector.broadcast %cst_82 : f32 to vector<64x48xf32>
    %235 = arith.mulf %234, %233 : vector<64x48xf32>
    %236 = arith.addf %204, %235 : vector<64x48xf32>
    %cst_83 = arith.constant 9.900000e-01 : f32
    %237 = vector.broadcast %cst_83 : f32 to vector<64x48xf32>
    %238 = arith.mulf %236, %237 : vector<64x48xf32>
    %239 = arith.addf %205, %238 : vector<64x48xf32>
    %cst_84 = arith.constant 1.000000e+00 : f32
    %240 = vector.broadcast %cst_84 : f32 to vector<8x32xf32>
    %241 = arith.subf %240, %212 : vector<8x32xf32>
    %242 = arith.mulf %226, %241 : vector<8x32xf32>
    %cst_85 = arith.constant 1.000000e+00 : f32
    %243 = vector.broadcast %cst_85 : f32 to vector<8x32xf32>
    %244 = arith.subf %243, %227 : vector<8x32xf32>
    %245 = arith.mulf %244, %212 : vector<8x32xf32>
    %246 = arith.addf %242, %245 : vector<8x32xf32>
    %247 = tpu.concatenate %0, %246 in 1 : vector<8x16xf32>, vector<8x32xf32> -> vector<8x48xf32>
    %cst_86 = arith.constant dense<0.000000e+00> : vector<8x64xf32>
    %248 = tpu.matmul %247, %239, %cst_86 {dimension_numbers = #tpu.dot_dimension_numbers<[1], [1], [0], [0], [0, 0, 1, 0], [], []>} : vector<8x48xf32>, vector<64x48xf32>, vector<8x64xf32> -> vector<8x64xf32>
    %249 = vector.broadcast %5 : vector<1x64xf32> to vector<8x64xf32>
    %250 = arith.addf %248, %249 : vector<8x64xf32>
    %251 = arith.negf %250 : vector<8x64xf32>
    %252 = math.exp %251 : vector<8x64xf32>
    %cst_87 = arith.constant 1.000000e+00 : f32
    %253 = vector.broadcast %cst_87 : f32 to vector<8x64xf32>
    %254 = arith.addf %253, %252 : vector<8x64xf32>
    %255 = arith.divf %253, %254 : vector<8x64xf32>
    %256 = vector.extract_strided_slice %255 {offsets = [0, 0], sizes = [8, 32], strides = [1, 1]} : vector<8x64xf32> to vector<8x32xf32>
    %257 = vector.extract_strided_slice %255 {offsets = [0, 32], sizes = [8, 32], strides = [1, 1]} : vector<8x64xf32> to vector<8x32xf32>
    %cst_88 = arith.constant 1.000000e+00 : f32
    %258 = vector.broadcast %cst_88 : f32 to vector<8x32xf32>
    %259 = arith.subf %258, %246 : vector<8x32xf32>
    %260 = arith.mulf %256, %259 : vector<8x32xf32>
    %cst_89 = arith.constant 1.000000e+00 : f32
    %261 = vector.broadcast %cst_89 : f32 to vector<8x32xf32>
    %262 = arith.subf %261, %257 : vector<8x32xf32>
    %263 = arith.mulf %262, %246 : vector<8x32xf32>
    %264 = arith.addf %260, %263 : vector<8x32xf32>
    %265 = tpu.concatenate %42, %76, %110, %144, %178, %212, %246, %264 in 1 : vector<8x32xf32>, vector<8x32xf32>, vector<8x32xf32>, vector<8x32xf32>, vector<8x32xf32>, vector<8x32xf32>, vector<8x32xf32>, vector<8x32xf32> -> vector<8x256xf32>
    %c0_90 = arith.constant 0 : index
    %c0_91 = arith.constant 0 : index
    %266 = vector.load %arg4[%c0_90, %c0_91] : memref<256x128xf32, #tpu.memory_space<vmem>>, vector<256x128xf32>
    %cst_92 = arith.constant dense<0.000000e+00> : vector<8x128xf32>
    %267 = tpu.matmul %265, %266, %cst_92 {dimension_numbers = #tpu.dot_dimension_numbers<[1], [0], [0], [1], [0, 0, 1, 1], [], []>} : vector<8x256xf32>, vector<256x128xf32>, vector<8x128xf32> -> vector<8x128xf32>
    %c0_93 = arith.constant 0 : index
    %c0_94 = arith.constant 0 : index
    %268 = vector.load %arg5[%c0_93, %c0_94] : memref<1x128xf32, #tpu.memory_space<vmem>>, vector<1x128xf32>
    %269 = vector.broadcast %268 : vector<1x128xf32> to vector<8x128xf32>
    %270 = arith.addf %267, %269 : vector<8x128xf32>
    %c0_95 = arith.constant 0 : index
    %c0_96 = arith.constant 0 : index
    %271 = vector.load %arg6[%c0_95, %c0_96] : memref<8x128xf32, #tpu.memory_space<vmem>>, vector<8x128xf32>
    tpu.vector_store %arg6[%c0_95, %c0_96], %270 {strides = array<i32>} : memref<8x128xf32, #tpu.memory_space<vmem>>, vector<8x128xf32>,
    %c0_97 = arith.constant 0 : index
    %c0_98 = arith.constant 0 : index
    %272 = vector.load %arg7[%c0_97, %c0_98] : memref<8x32xf32, #tpu.memory_space<vmem>>, vector<8x32xf32>
    tpu.vector_store %arg7[%c0_97, %c0_98], %264 {strides = array<i32>} : memref<8x32xf32, #tpu.memory_space<vmem>>, vector<8x32xf32>,
    return
  }
}

</mosaic_0001>

<bundles_post_ra>
// kernel: tile.8
= control target key start
LH: loop header
LB: loop body
LE: loop exit
PB: predicated region body
PF: predicated region fallthrough
CT: control target
= control target key end

     0   :  { %s22_s0 = inlined_call_operand.vmem [shape: f32[16], index: 0, kind: input, shape index: {}]   ;;  %s23_s1 = inlined_call_operand.vmem [shape: f32[8,16], index: 1, kind: output, shape index: {}]  }
   0x1   :  { %v4_v0 = vld [vmem:[%s22_s0] ss:$0 sm:$0xff] }
   0x2   :  { %5 = vst [vmem:[%s23_s1] sm:$0xff] %v4_v0 }

// kernel: tile.9
= control target key start
LH: loop header
LB: loop body
LE: loop exit
PB: predicated region body
PF: predicated region fallthrough
CT: control target
= control target key end

     0   :  { %s69_s10 = smov 112   ;;  %s70_s11 = smov 80   ;;  %vm3_vm0 = vcmask 130048   ;;  %vm9_vm1 = vcmask 1048448   ;;  %vm15_vm2 = vcmask 917248   ;;  %vm21_vm3 = vcmask 786048   ;;  %s113_s0 = inlined_call_operand.vmem [shape: f32[8,16], index: 0, kind: input, shape index: {}]   ;;  %s114_s1 = inlined_call_operand.vmem [shape: f32[1,128], index: 1, kind: output, shape index: {}]  }
   0x1   :  { %v55_v0 = vld [vmem:[%s113_s0 + $0x7] sm:$0x1]   ;;  %v57_v1 = vld [vmem:[%s113_s0 + $0x5] sm:$0x1]   ;;  %v56_v2 = vld [vmem:[%s113_s0 + $0x6] sm:$0x1]  }
   0x2   :  { %7 = vrot.lane.b32.xlu0 %v55_v0, %s69_s10  ;;  %19 = vrot.lane.b32.xlu1 %v57_v1, %s70_s11  ;;  %v58_v3 = vld [vmem:[%s113_s0 + $0x4] sm:$0x1]   ;;  %v2_v4 = vld [vmem:[%s113_s0] sm:$0x1]   ;;  %s71_s18 = smov 96   ;;  %s72_s19 = smov 64  }
   0x3   :  { %4 = vst.msk [vmem:[#allocation0] sm:$0x1] %vm3_vm0, %v2_v4   ;;  %v59_v5 = vld [vmem:[%s113_s0 + $0x3] sm:$0x1]   ;;  %v60_v6 = vld [vmem:[%s113_s0 + $0x2] sm:$0x1]  }
   0x4   :  { %s73_s24 = smov 48   ;;  %s74_s25 = smov 32   ;;  %v61_v7 = vld [vmem:[%s113_s0 + $0x1] sm:$0x1]   ;;  %vm27_vm4 = vcmask 654848   ;;  %vm33_vm5 = vcmask 523648  }
   0x5   :  { %s75_s0 = smov 16   ;;  %vm39_vm6 = vcmask 392448   ;;  %vm45_vm7 = vcmask 261248  }
   0x6   :  { %13 = vrot.lane.b32.xlu0 %v56_v2, %s71_s18  ;;  %25 = vrot.lane.b32.xlu1 %v58_v3, %s72_s19 }
   0xa   :  { %31 = vrot.lane.b32.xlu0 %v59_v5, %s73_s24  ;;  %37 = vrot.lane.b32.xlu1 %v60_v6, %s74_s25 }
   0xe   :  { %43 = vrot.lane.b32.xlu0 %v61_v7, %s75_s0 }
  0x74   :  { %v8_v8 = vpop.permute.xlu0 %7   ;;  %v20_v9 = vpop.permute.xlu1 %19  }
  0x75   :  { %10 = vst.msk [vmem:[#allocation0] sm:$0x1] %vm9_vm1, %v8_v8  }
  0x78   :  { %v14_v10 = vpop.permute.xlu0 %13   ;;  %v26_v11 = vpop.permute.xlu1 %25  }
  0x79   :  { %16 = vst.msk [vmem:[#allocation0] sm:$0x1] %vm15_vm2, %v14_v10  }
  0x7a   :  { %22 = vst.msk [vmem:[#allocation0] sm:$0x1] %vm21_vm3, %v20_v9  }
  0x7b   :  { %28 = vst.msk [vmem:[#allocation0] sm:$0x1] %vm27_vm4, %v26_v11  }
  0x7c   :  { %v32_v12 = vpop.permute.xlu0 %31   ;;  %v38_v13 = vpop.permute.xlu1 %37  }
  0x7d   :  { %34 = vst.msk [vmem:[#allocation0] sm:$0x1] %vm33_vm5, %v32_v12  }
  0x7e   :  { %40 = vst.msk [vmem:[#allocation0] sm:$0x1] %vm39_vm6, %v38_v13  }
  0x80   :  { %v44_v14 = vpop.permute.xlu0 %43  }
  0x81   :  { %46 = vst.msk [vmem:[#allocation0] sm:$0x1] %vm45_vm7, %v44_v14  }
  0x88   :  { %v51_v15 = vld [vmem:[#allocation0] sm:$0x1] }
  0x89   :  { %54 = vst [vmem:[%s114_s1] sm:$0x1] %v51_v15 }

// kernel: signal_flipflop_layer_hebbian.1
= control target key start
LH: loop header
LB: loop body
LE: loop exit
PB: predicated region body
PF: predicated region fallthrough
CT: control target
= control target key end

     0   :  { %vm67_vm0 = vcmask 392192   ;;  %s3324_s28 = smov 16   ;;  %v3325_v2 = vmov 0.0   ;;  %vm3326_vm1 = vmmov 0   ;;  %s4314_s0 = inlined_call_operand.vmem [shape: f32[8,16], index: 0, kind: input, shape index: {}]   ;;  %s4315_s1 = inlined_call_operand.vmem [shape: f32[8,32], index: 1, kind: input, shape index: {}]   ;;  %s4316_s2 = inlined_call_operand.vmem [shape: f32[64,48], index: 2, kind: input, shape index: {}]   ;;  %s4317_s3 = inlined_call_operand.vmem [shape: f32[1,64], index: 3, kind: input, shape index: {}]   ;;  %s4318_s4 = inlined_call_operand.vmem [shape: f32[256,128], index: 4, kind: input, shape index: {}]   ;;  %s4319_s5 = inlined_call_operand.vmem [shape: f32[1,128], index: 5, kind: input, shape index: {}]   ;;  %s4320_s6 = inlined_call_operand.vmem [shape: f32[8,128], index: 6, kind: output, shape index: {0}]   ;;  %s4321_s7 = inlined_call_operand.hbm [shape: f32[8,32], index: 7, kind: output, shape index: {1}]  }
   0x1   :  { %v3374_v0 = vld [vmem:[%s4315_s1] sm:$0xff]  ;;  %v3379_v1 = vld [vmem:[%s4316_s2 + $0x38] sm:$0xff]  ;;  %3001 = vmatprep.subr.mxu0 %v3325_v2  ;;  %3017 = vmatprep.mubr.msk.f32.mxu0 %vm3326_vm1, %v3325_v2  ;;  %v3392_v3 = vld [vmem:[%s4316_s2 + $0x30] sm:$0xff] }
   0x2   :  { %57 = vrot.lane.b32.xlu0 %v3374_v0, %s3324_s28  ;;  %3002 = vmatpush3.xpose.msk.msra.mxu0 %vm67_vm0, %v3379_v1 }
   0x3   :  { %3003 = vmatprep.subr.mxu0 %v3325_v2 }
   0x4   :  { %13 = vsyncpa [#allocation3], 0  ;;  %v3400_v4 = vld [vmem:[%s4316_s2 + $0x28] sm:$0xff]  ;;  %v3408_v5 = vld [vmem:[%s4316_s2 + $0x20] sm:$0xff]  ;;  %vm27_vm2 = vcmask 130048   ;;  %vm47_vm3 = vcmask 261120  }
   0x5   :  { %v3416_v6 = vld [vmem:[%s4316_s2 + $0x18] sm:$0xff]  ;;  %v3424_v7 = vld [vmem:[%s4316_s2 + $0x10] sm:$0xff]  ;;  %v3432_v8 = vld [vmem:[%s4316_s2 + $0x8] sm:$0xff]  ;;  %v48_v13 = vsel %vm47_vm3, %v3374_v0, 0.0  ;;  %vm171_vm4 = vcmask 523264   ;;  %vm242_vm5 = vcmask 1040384  }
   0x6   :  { %3004 = vmatpush3.xpose.msk.msra.mxu0 %vm67_vm0, %v3392_v3  ;;  %v3440_v9 = vld [vmem:[%s4316_s2] sm:$0xff]  ;;  %v49_v14 = vrot.slane %v48_v13, 4  ;;  %s3327_s22 = smov 32   ;;  %vm217_vm6 = vcmask 7168   ;;  %s3328_s23 = smov 96   ;;  %v383_v58 = vsub.f32 1.0, %v3374_v0 }
   0x7   :  { %3005 = vmatprep.subr.mxu0 %v3325_v2  ;;  %v3447_v10 = vld [vmem:[%s4314_s0] sm:$0xff]  ;;  %s3329_s29 = smov 64   ;;  %vm2552_vm7 = vcmask 785408  }
   0x8   :  { %v50_v15 = vadd.f32 %v49_v14, %v48_v13  ;;  %v3458_v21 = vld [vmem:[%s4317_s3] ss:$0 sm:$0xff]  ;;  %v28_v35 = vsel %vm27_vm2, %v3447_v10, 0.0 }
   0x9   :  { %v29_v37 = vrot.slane %v28_v35, 4 }
   0xa   :  { %3006 = vmatpush3.xpose.msk.msra.mxu0 %vm67_vm0, %v3400_v4  ;;  %v51_v16 = vrot.slane %v50_v15, 2 }
   0xb   :  { %3007 = vmatprep.subr.mxu0 %v3325_v2  ;;  %v30_v39 = vadd.f32 %v29_v37, %v28_v35 }
   0xc   :  { %v52_v17 = vadd.f32 %v51_v16, %v50_v15 }
   0xd   :  { %v31_v40 = vrot.slane %v30_v39, 2 }
   0xe   :  { %3008 = vmatpush3.xpose.msk.msra.mxu0 %vm67_vm0, %v3408_v5  ;;  %v53_v18 = vrot.slane %v52_v17, 1 }
   0xf   :  { %3009 = vmatprep.subr.mxu0 %v3325_v2  ;;  %v32_v41 = vadd.f32 %v31_v40, %v30_v39 }
  0x10   :  { %v54_v19 = vadd.f32 %v53_v18, %v52_v17 }
  0x11   :  { %v33_v42 = vrot.slane %v32_v41, 1 }
  0x12   :  { %3010 = vmatpush3.xpose.msk.msra.mxu0 %vm67_vm0, %v3416_v6  ;;  %v55_v20 = vmul.f32 0.125, %v54_v19 }
  0x13   :  { %3011 = vmatprep.subr.mxu0 %v3325_v2  ;;  %v34_v43 = vadd.f32 %v33_v42, %v32_v41 }
  0x14   :  { %181 = vrot.lane.b32.xlu0 %v55_v20, %s3324_s28 }
  0x15   :  { %v3464_v45 = vmul.f32 0.125, %v34_v43 }
  0x16   :  { %3012 = vmatpush3.xpose.msk.msra.mxu0 %vm67_vm0, %v3424_v7 }
  0x17   :  { %3013 = vmatprep.subr.mxu0 %v3325_v2 }
  0x1a   :  { %3014 = vmatpush3.xpose.msk.msra.mxu0 %vm67_vm0, %v3432_v8 }
  0x1b   :  { %3015 = vmatprep.subr.mxu0 %v3325_v2 }
  0x1e   :  { %3016 = vmatpush3.xpose.msk.msra.mxu0 %vm67_vm0, %v3440_v9 }
  0x74   :  { %v58_v11 = vpop.permute.xlu0 %57 }
  0x75   :  { %v60_v12 = vsel %vm27_vm2, %v3447_v10, %v58_v11 }
  0x76   :  { %3018 = vmatmul.mubr.msk.f32.vlgmr.msra.gmra.mxu0 %vm67_vm0, %v60_v12 }
  0x86   :  { %v182_v44 = vpop.permute.xlu0 %181 }
  0x87   :  { %v184_v46 = vsel %vm27_vm2, %v3464_v45, %v182_v44 }
  0x88   :  { %3020 = vmatprep.subr.msk.mxu1 %vm242_vm5, %v184_v46 }
  0x89   :  { %3021 = vmatpush3.msk.msra.mxu1 %vm242_vm5, %v184_v46 }
  0x8a   :  { %3034 = vmatprep.subr.mxu1 %v3325_v2 }
 0x136   :  { %v161_v22 = vpop.f32.mrf.mxu0 }
 0x137   :  { %v162_v23 = vadd.f32 %v3458_v21, %v161_v22 }
 0x138   :  { %v3019_v24 = vpop.f32.mrf.mxu0 }
 0x139   :  { %v2696_v25 = vmul.f32 -1.442695, %v162_v23 }
 0x13b   :  { %3268 = vpow2.f32 %v2696_v25 }
 0x148   :  { %v3269_v26 = vpop.eup %3268 }
 0x149   :  { %v168_v27 = vadd.f32 1.0, %v3269_v26 }
 0x14b   :  { %3270 = vrcp.f32 %v168_v27 }
 0x158   :  { %v3271_v28 = vpop.eup %3270 }
 0x159   :  { %v172_v29 = vsel %vm171_vm4, %v3271_v28, 0.0  ;;  %v385_v55 = vsub.f32 1.0, %v3271_v28  ;;  %v384_v59 = vmul.f32 %v3271_v28, %v383_v58 }
 0x15a   :  { %v173_v30 = vrot.slane %v172_v29, 4 }
 0x15c   :  { %v174_v31 = vadd.f32 %v173_v30, %v172_v29 }
 0x15e   :  { %v175_v32 = vrot.slane %v174_v31, 2 }
 0x160   :  { %v176_v33 = vadd.f32 %v175_v32, %v174_v31 }
 0x162   :  { %v177_v34 = vrot.slane %v176_v33, 1 }
 0x164   :  { %v178_v36 = vadd.f32 %v177_v34, %v176_v33 }
 0x166   :  { %v179_v38 = vmul.f32 0.125, %v178_v36 }
 0x168   :  { %185 = vxpose.xlu1.b32.start.end [1/1] (short) (narrow) %v179_v38, 64 }
 0x1a2   :  { %386 = vrot.lane.b32.xlu1 %v3374_v0, %s3327_s22 }
 0x1e4   :  { %v201_v47 = vpop.trf.xlu1 }
 0x1e5   :  { %3022 = vmatprep.mubr.msk.f32.mxu1 %vm217_vm6, %v201_v47 }
 0x1e8   :  { %v202_v48 = vpop.trf.xlu1 }
 0x1e9   :  { %3023 = vmatmul.mubr.msk.f32.vlgmr.msra.gmra.mxu1 %vm217_vm6, %v202_v48 }
 0x1ec   :  { %v203_v49 = vpop.trf.xlu1 }
 0x1ed   :  { %3025 = vmatprep.mubr.msk.f32.mxu1 %vm217_vm6, %v203_v49 }
 0x1f0   :  { %v204_v50 = vpop.trf.xlu1 }
 0x1f1   :  { %3026 = vmatmul.mubr.msk.f32.gmra.mxu1 %vm217_vm6, %v204_v50 }
 0x1f4   :  { %v205_v51 = vpop.trf.xlu1 }
 0x1f5   :  { %3028 = vmatprep.mubr.msk.f32.mxu1 %vm217_vm6, %v205_v51 }
 0x1f8   :  { %v206_v52 = vpop.trf.xlu1 }
 0x1f9   :  { %3029 = vmatmul.mubr.msk.f32.gmra.mxu1 %vm217_vm6, %v206_v52 }
 0x1fc   :  { %v207_v53 = vpop.trf.xlu1 }
 0x1fd   :  { %3031 = vmatprep.mubr.msk.f32.mxu1 %vm217_vm6, %v207_v53 }
 0x200   :  { %v208_v54 = vpop.trf.xlu1 }
 0x201   :  { %3032 = vmatmul.mubr.msk.f32.gmra.mxu1 %vm217_vm6, %v208_v54 }
 0x202   :  { %3050 = vmatprep.mubr.msk.f32.mxu1 %vm3326_vm1, %v3325_v2 }
 0x214   :  { %v387_v56 = vpop.permute.xlu1 %386 }
 0x215   :  { %v389_v57 = vmul.f32 %v387_v56, %v385_v55 }
 0x217   :  { %391 = vrot.lane.b32.xlu0 %v389_v57, %s3328_s23 }
 0x289   :  { %v392_v60 = vpop.permute.xlu0 %391 }
 0x28a   :  { %v3485_v61 = vadd.f32 %v392_v60, %v384_v59 }
 0x28c   :  { %404 = vrot.lane.b32.xlu0 %v3485_v61, %s3324_s28  ;;  %v395_v62 = vsel %vm47_vm3, %v3485_v61, 0.0 }
 0x28d   :  { %v396_v63 = vrot.slane %v395_v62, 4 }
 0x28f   :  { %v397_v11 = vadd.f32 %v396_v63, %v395_v62 }
 0x291   :  { %v398_v12 = vrot.slane %v397_v11, 2 }
 0x293   :  { %v399_v13 = vadd.f32 %v398_v12, %v397_v11 }
 0x295   :  { %v400_v14 = vrot.slane %v399_v13, 1 }
 0x297   :  { %v401_v15 = vadd.f32 %v400_v14, %v399_v13 }
 0x299   :  { %v402_v16 = vmul.f32 0.125, %v401_v15 }
 0x29b   :  { %520 = vrot.lane.b32.xlu0 %v402_v16, %s3324_s28 }
 0x2a9   :  { %v3024_v0 = vpop.f32.mrf.mxu1 }
 0x2aa   :  { %v352_v37 = vmul.f32 0.01, %v3024_v0 }
 0x2ab   :  { %v312_v17 = vpop.f32.mrf.mxu1 }
 0x2ac   :  { %v3539_v40 = vmul.f32 0.99, %v352_v37 }
 0x2b1   :  { %v3027_v18 = vpop.f32.mrf.mxu1 }
 0x2b3   :  { %v322_v19 = vpop.f32.mrf.mxu1 }
 0x2b4   :  { %v353_v36 = vmul.f32 0.01, %v322_v19  ;;  %v720_v19 = vsub.f32 1.0, %v3485_v61 }
 0x2b6   :  { %v3534_v39 = vmul.f32 0.99, %v353_v36 }
 0x2b8   :  { %v3543_v41 = vadd.f32 %v3534_v39, %v3424_v7 }
 0x2b9   :  { %v3030_v20 = vpop.f32.mrf.mxu1 }
 0x2ba   :  { %v356_v26 = vmul.f32 0.01, %v3030_v20 }
 0x2bb   :  { %v332_v22 = vpop.f32.mrf.mxu1 }
 0x2bc   :  { %v3500_v31 = vmul.f32 0.99, %v356_v26  ;;  %v355_v33 = vmul.f32 0.01, %v332_v22 }
 0x2be   :  { %v3511_v34 = vadd.f32 %v3500_v31, %v3400_v4  ;;  %v3516_v35 = vmul.f32 0.99, %v355_v33 }
 0x2c0   :  { %v3525_v4 = vadd.f32 %v3516_v35, %v3408_v5  ;;  %v351_v5 = vmul.f32 0.01, %v312_v17 }
 0x2c1   :  { %v3033_v23 = vpop.f32.mrf.mxu1 }
 0x2c2   :  { %v358_v24 = vmul.f32 0.01, %v3033_v23  ;;  %v3552_v42 = vmul.f32 0.99, %v351_v5 }
 0x2c3   :  { %v342_v25 = vpop.f32.mrf.mxu1 }
 0x2c4   :  { %v3492_v27 = vmul.f32 0.99, %v358_v24  ;;  %v357_v28 = vmul.f32 0.01, %v342_v25  ;;  %v3559_v7 = vadd.f32 %v3552_v42, %v3440_v9 }
 0x2c6   :  { %v3496_v29 = vadd.f32 %v3492_v27, %v3379_v1  ;;  %v3498_v30 = vmul.f32 0.99, %v357_v28  ;;  %v354_v1 = vmul.f32 0.01, %v3027_v18 }
 0x2c8   :  { %v3504_v32 = vadd.f32 %v3498_v30, %v3392_v3  ;;  %3035 = vmatpush3.xpose.msk.msra.mxu1 %vm67_vm0, %v3496_v29  ;;  %v3521_v3 = vmul.f32 0.99, %v354_v1 }
 0x2c9   :  { %3036 = vmatprep.subr.mxu1 %v3325_v2 }
 0x2ca   :  { %v3532_v38 = vadd.f32 %v3521_v3, %v3416_v6  ;;  %v3550_v6 = vadd.f32 %v3539_v40, %v3432_v8 }
 0x2cc   :  { %3037 = vmatpush3.xpose.msk.msra.mxu1 %vm67_vm0, %v3504_v32 }
 0x2cd   :  { %3038 = vmatprep.subr.mxu1 %v3325_v2 }
 0x2d0   :  { %3039 = vmatpush3.xpose.msk.msra.mxu1 %vm67_vm0, %v3511_v34 }
 0x2d1   :  { %3040 = vmatprep.subr.mxu1 %v3325_v2 }
 0x2d4   :  { %3041 = vmatpush3.xpose.msk.msra.mxu1 %vm67_vm0, %v3525_v4 }
 0x2d5   :  { %3042 = vmatprep.subr.mxu1 %v3325_v2 }
 0x2d8   :  { %3043 = vmatpush3.xpose.msk.msra.mxu1 %vm67_vm0, %v3532_v38 }
 0x2d9   :  { %3044 = vmatprep.subr.mxu1 %v3325_v2 }
 0x2dc   :  { %3045 = vmatpush3.xpose.msk.msra.mxu1 %vm67_vm0, %v3543_v41 }
 0x2dd   :  { %3046 = vmatprep.subr.mxu1 %v3325_v2 }
 0x2e0   :  { %3047 = vmatpush3.xpose.msk.msra.mxu1 %vm67_vm0, %v3550_v6 }
 0x2e1   :  { %3048 = vmatprep.subr.mxu1 %v3325_v2 }
 0x2e4   :  { %3049 = vmatpush3.xpose.msk.msra.mxu1 %vm67_vm0, %v3559_v7 }
 0x2e5   :  { %3067 = vmatprep.subr.mxu1 %v3325_v2 }
 0x2fe   :  { %v405_v43 = vpop.permute.xlu0 %404 }
 0x2ff   :  { %v407_v8 = vsel %vm27_vm2, %v3447_v10, %v405_v43 }
 0x300   :  { %3051 = vmatmul.mubr.msk.f32.vlgmr.msra.gmra.mxu1 %vm67_vm0, %v407_v8 }
 0x301   :  { %3083 = vmatprep.mubr.msk.f32.mxu1 %vm3326_vm1, %v3325_v2 }
 0x30d   :  { %v521_v44 = vpop.permute.xlu0 %520 }
 0x30e   :  { %v523_v46 = vsel %vm27_vm2, %v3464_v45, %v521_v44 }
 0x30f   :  { %3053 = vmatprep.subr.msk.mxu0 %vm242_vm5, %v523_v46 }
 0x310   :  { %3054 = vmatpush3.msk.msra.mxu0 %vm242_vm5, %v523_v46 }
 0x3c0   :  { %v501_v9 = vpop.f32.mrf.mxu1 }
 0x3c1   :  { %v502_v47 = vadd.f32 %v3458_v21, %v501_v9 }
 0x3c2   :  { %v3052_v48 = vpop.f32.mrf.mxu1 }
 0x3c3   :  { %v2715_v49 = vmul.f32 -1.442695, %v502_v47 }
 0x3c5   :  { %3272 = vpow2.f32 %v2715_v49 }
 0x3d2   :  { %v3273_v50 = vpop.eup %3272 }
 0x3d3   :  { %v508_v51 = vadd.f32 1.0, %v3273_v50 }
 0x3d5   :  { %3274 = vrcp.f32 %v508_v51 }
 0x3e2   :  { %v3275_v52 = vpop.eup %3274 }
 0x3e3   :  { %v511_v53 = vsel %vm171_vm4, %v3275_v52, 0.0  ;;  %v722_v0 = vsub.f32 1.0, %v3275_v52  ;;  %v721_v20 = vmul.f32 %v3275_v52, %v720_v19 }
 0x3e4   :  { %v512_v54 = vrot.slane %v511_v53, 4 }
 0x3e6   :  { %v513_v55 = vadd.f32 %v512_v54, %v511_v53 }
 0x3e8   :  { %v514_v56 = vrot.slane %v513_v55, 2 }
 0x3ea   :  { %v515_v57 = vadd.f32 %v514_v56, %v513_v55 }
 0x3ec   :  { %v516_v58 = vrot.slane %v515_v57, 1 }
 0x3ee   :  { %v517_v59 = vadd.f32 %v516_v58, %v515_v57 }
 0x3f0   :  { %v518_v60 = vmul.f32 0.125, %v517_v59 }
 0x3f2   :  { %524 = vxpose.xlu0.b32.start.end [1/1] (short) (narrow) %v518_v60, 64 }
 0x437   :  { %723 = vrot.lane.b32.xlu0 %v3485_v61, %s3327_s22 }
 0x46e   :  { %v540_v62 = vpop.trf.xlu0 }
 0x46f   :  { %3055 = vmatprep.mubr.msk.f32.mxu0 %vm217_vm6, %v540_v62 }
 0x472   :  { %v541_v63 = vpop.trf.xlu0 }
 0x473   :  { %3056 = vmatmul.mubr.msk.f32.vlgmr.msra.gmra.mxu0 %vm217_vm6, %v541_v63 }
 0x476   :  { %v542_v11 = vpop.trf.xlu0 }
 0x477   :  { %3058 = vmatprep.mubr.msk.f32.mxu0 %vm217_vm6, %v542_v11 }
 0x47a   :  { %v543_v12 = vpop.trf.xlu0 }
 0x47b   :  { %3059 = vmatmul.mubr.msk.f32.gmra.mxu0 %vm217_vm6, %v543_v12 }
 0x47e   :  { %v544_v13 = vpop.trf.xlu0 }
 0x47f   :  { %3061 = vmatprep.mubr.msk.f32.mxu0 %vm217_vm6, %v544_v13 }
 0x482   :  { %v545_v14 = vpop.trf.xlu0 }
 0x483   :  { %3062 = vmatmul.mubr.msk.f32.gmra.mxu0 %vm217_vm6, %v545_v14 }
 0x486   :  { %v546_v15 = vpop.trf.xlu0 }
 0x487   :  { %3064 = vmatprep.mubr.msk.f32.mxu0 %vm217_vm6, %v546_v15 }
 0x48a   :  { %v547_v16 = vpop.trf.xlu0 }
 0x48b   :  { %3065 = vmatmul.mubr.msk.f32.gmra.mxu0 %vm217_vm6, %v547_v16 }
 0x4a9   :  { %v724_v17 = vpop.permute.xlu0 %723 }
 0x4aa   :  { %v726_v18 = vmul.f32 %v724_v17, %v722_v0 }
 0x4ac   :  { %728 = vrot.lane.b32.xlu1 %v726_v18, %s3328_s23 }
 0x51e   :  { %v729_v22 = vpop.permute.xlu1 %728 }
 0x51f   :  { %v3587_v23 = vadd.f32 %v729_v22, %v721_v20 }
 0x521   :  { %v732_v24 = vsel %vm47_vm3, %v3587_v23, 0.0  ;;  %741 = vrot.lane.b32.xlu1 %v3587_v23, %s3324_s28 }
 0x522   :  { %v733_v25 = vrot.slane %v732_v24, 4 }
 0x524   :  { %v734_v26 = vadd.f32 %v733_v25, %v732_v24 }
 0x526   :  { %v735_v28 = vrot.slane %v734_v26, 2 }
 0x528   :  { %v736_v33 = vadd.f32 %v735_v28, %v734_v26 }
 0x52a   :  { %v737_v1 = vrot.slane %v736_v33, 1 }
 0x52c   :  { %v738_v36 = vadd.f32 %v737_v1, %v736_v33 }
 0x52e   :  { %v739_v37 = vmul.f32 0.125, %v738_v36 }
 0x530   :  { %857 = vrot.lane.b32.xlu1 %v739_v37, %s3324_s28 }
 0x533   :  { %v3057_v5 = vpop.f32.mrf.mxu0 }
 0x535   :  { %v649_v43 = vpop.f32.mrf.mxu0 }
 0x536   :  { %v688_v12 = vmul.f32 0.01, %v649_v43 }
 0x53b   :  { %v3060_v8 = vpop.f32.mrf.mxu0 }
 0x53d   :  { %v659_v44 = vpop.f32.mrf.mxu0 }
 0x543   :  { %v3063_v46 = vpop.f32.mrf.mxu0 }
 0x544   :  { %v693_v50 = vmul.f32 0.01, %v3063_v46 }
 0x545   :  { %v669_v9 = vpop.f32.mrf.mxu0 }
 0x546   :  { %v701_v55 = vadd.f32 %v693_v50, %v3500_v31  ;;  %v692_v56 = vmul.f32 0.01, %v669_v9  ;;  %v690_v31 = vmul.f32 0.01, %v659_v44 }
 0x548   :  { %v3608_v59 = vmul.f32 0.99, %v701_v55  ;;  %v700_v60 = vadd.f32 %v692_v56, %v3516_v35  ;;  %v698_v11 = vadd.f32 %v690_v31, %v3534_v39  ;;  %v696_v39 = vadd.f32 %v688_v12, %v3552_v42 }
 0x54a   :  { %v3621_v62 = vadd.f32 %v3608_v59, %v3511_v34  ;;  %v3623_v63 = vmul.f32 0.99, %v700_v60  ;;  %v3643_v14 = vmul.f32 0.99, %v698_v11 }
 0x54b   :  { %v3066_v47 = vpop.f32.mrf.mxu0 }
 0x54c   :  { %v695_v48 = vmul.f32 0.01, %v3066_v47  ;;  %v3653_v15 = vadd.f32 %v3643_v14, %v3543_v41 }
 0x54d   :  { %v679_v49 = vpop.f32.mrf.mxu0 }
 0x54e   :  { %v703_v51 = vadd.f32 %v695_v48, %v3492_v27  ;;  %v694_v52 = vmul.f32 0.01, %v679_v49  ;;  %v691_v27 = vmul.f32 0.01, %v3060_v8 }
 0x550   :  { %v3595_v53 = vmul.f32 0.99, %v703_v51  ;;  %v702_v54 = vadd.f32 %v694_v52, %v3498_v30 }
 0x552   :  { %v3601_v57 = vadd.f32 %v3595_v53, %v3496_v29  ;;  %v3603_v58 = vmul.f32 0.99, %v702_v54  ;;  %v699_v29 = vadd.f32 %v691_v27, %v3521_v3  ;;  %v3633_v3 = vadd.f32 %v3623_v63, %v3525_v4 }
 0x553   :  { %v1057_v54 = vsub.f32 1.0, %v3587_v23 }
 0x554   :  { %3068 = vmatpush3.xpose.msk.msra.mxu1 %vm67_vm0, %v3601_v57  ;;  %v3613_v30 = vadd.f32 %v3603_v58, %v3504_v32  ;;  %v689_v32 = vmul.f32 0.01, %v3057_v5  ;;  %v3628_v35 = vmul.f32 0.99, %v699_v29 }
 0x555   :  { %3069 = vmatprep.subr.mxu1 %v3325_v2 }
 0x556   :  { %v697_v34 = vadd.f32 %v689_v32, %v3539_v40  ;;  %v3641_v13 = vadd.f32 %v3628_v35, %v3532_v38  ;;  %v3662_v40 = vmul.f32 0.99, %v696_v39 }
 0x558   :  { %3070 = vmatpush3.xpose.msk.msra.mxu1 %vm67_vm0, %v3613_v30  ;;  %v3648_v4 = vmul.f32 0.99, %v697_v34  ;;  %v3669_v41 = vadd.f32 %v3662_v40, %v3559_v7 }
 0x559   :  { %3071 = vmatprep.subr.mxu1 %v3325_v2 }
 0x55a   :  { %v3660_v38 = vadd.f32 %v3648_v4, %v3550_v6 }
 0x55c   :  { %3072 = vmatpush3.xpose.msk.msra.mxu1 %vm67_vm0, %v3621_v62 }
 0x55d   :  { %3073 = vmatprep.subr.mxu1 %v3325_v2 }
 0x560   :  { %3074 = vmatpush3.xpose.msk.msra.mxu1 %vm67_vm0, %v3633_v3 }
 0x561   :  { %3075 = vmatprep.subr.mxu1 %v3325_v2 }
 0x564   :  { %3076 = vmatpush3.xpose.msk.msra.mxu1 %vm67_vm0, %v3641_v13 }
 0x565   :  { %3077 = vmatprep.subr.mxu1 %v3325_v2 }
 0x568   :  { %3078 = vmatpush3.xpose.msk.msra.mxu1 %vm67_vm0, %v3653_v15 }
 0x569   :  { %3079 = vmatprep.subr.mxu1 %v3325_v2 }
 0x56c   :  { %3080 = vmatpush3.xpose.msk.msra.mxu1 %vm67_vm0, %v3660_v38 }
 0x56d   :  { %3081 = vmatprep.subr.mxu1 %v3325_v2 }
 0x570   :  { %3082 = vmatpush3.xpose.msk.msra.mxu1 %vm67_vm0, %v3669_v41 }
 0x593   :  { %v742_v42 = vpop.permute.xlu1 %741 }
 0x594   :  { %v744_v16 = vsel %vm27_vm2, %v3447_v10, %v742_v42 }
 0x595   :  { %3084 = vmatmul.mubr.msk.f32.vlgmr.msra.gmra.mxu1 %vm67_vm0, %v744_v16 }
 0x5a2   :  { %v858_v6 = vpop.permute.xlu1 %857 }
 0x5a3   :  { %v860_v0 = vsel %vm27_vm2, %v3464_v45, %v858_v6 }
 0x5a4   :  { %3086 = vmatprep.subr.msk.mxu0 %vm242_vm5, %v860_v0 }
 0x5a5   :  { %3087 = vmatpush3.msk.msra.mxu0 %vm242_vm5, %v860_v0 }
 0x5a6   :  { %3100 = vmatprep.subr.mxu0 %v3325_v2 }
 0x655   :  { %v838_v7 = vpop.f32.mrf.mxu1 }
 0x656   :  { %v839_v17 = vadd.f32 %v3458_v21, %v838_v7 }
 0x657   :  { %v3085_v18 = vpop.f32.mrf.mxu1 }
 0x658   :  { %v2734_v19 = vmul.f32 -1.442695, %v839_v17 }
 0x65a   :  { %3276 = vpow2.f32 %v2734_v19 }
 0x667   :  { %v3277_v20 = vpop.eup %3276 }
 0x668   :  { %v845_v22 = vadd.f32 1.0, %v3277_v20 }
 0x66a   :  { %3278 = vrcp.f32 %v845_v22 }
 0x677   :  { %v3279_v24 = vpop.eup %3278 }
 0x678   :  { %v848_v25 = vsel %vm171_vm4, %v3279_v24, 0.0  ;;  %v1059_v50 = vsub.f32 1.0, %v3279_v24  ;;  %v1058_v55 = vmul.f32 %v3279_v24, %v1057_v54 }
 0x679   :  { %v849_v26 = vrot.slane %v848_v25, 4 }
 0x67b   :  { %v850_v28 = vadd.f32 %v849_v26, %v848_v25 }
 0x67d   :  { %v851_v33 = vrot.slane %v850_v28, 2 }
 0x67f   :  { %v852_v1 = vadd.f32 %v851_v33, %v850_v28 }
 0x681   :  { %v853_v36 = vrot.slane %v852_v1, 1 }
 0x683   :  { %v854_v37 = vadd.f32 %v853_v36, %v852_v1 }
 0x685   :  { %v855_v5 = vmul.f32 0.125, %v854_v37 }
 0x687   :  { %861 = vxpose.xlu1.b32.start.end [1/1] (short) (narrow) %v855_v5, 64 }
 0x6c1   :  { %1060 = vrot.lane.b32.xlu1 %v3587_v23, %s3327_s22 }
 0x703   :  { %v877_v43 = vpop.trf.xlu1 }
 0x704   :  { %3088 = vmatprep.mubr.msk.f32.mxu0 %vm217_vm6, %v877_v43 }
 0x707   :  { %v878_v8 = vpop.trf.xlu1 }
 0x708   :  { %3089 = vmatmul.mubr.msk.f32.vlgmr.msra.gmra.mxu0 %vm217_vm6, %v878_v8 }
 0x70b   :  { %v879_v44 = vpop.trf.xlu1 }
 0x70c   :  { %3091 = vmatprep.mubr.msk.f32.mxu0 %vm217_vm6, %v879_v44 }
 0x70f   :  { %v880_v46 = vpop.trf.xlu1 }
 0x710   :  { %3092 = vmatmul.mubr.msk.f32.gmra.mxu0 %vm217_vm6, %v880_v46 }
 0x713   :  { %v881_v9 = vpop.trf.xlu1 }
 0x714   :  { %3094 = vmatprep.mubr.msk.f32.mxu0 %vm217_vm6, %v881_v9 }
 0x717   :  { %v882_v47 = vpop.trf.xlu1 }
 0x718   :  { %3095 = vmatmul.mubr.msk.f32.gmra.mxu0 %vm217_vm6, %v882_v47 }
 0x71b   :  { %v883_v48 = vpop.trf.xlu1 }
 0x71c   :  { %3097 = vmatprep.mubr.msk.f32.mxu0 %vm217_vm6, %v883_v48 }
 0x71f   :  { %v884_v49 = vpop.trf.xlu1 }
 0x720   :  { %3098 = vmatmul.mubr.msk.f32.gmra.mxu0 %vm217_vm6, %v884_v49 }
 0x721   :  { %3116 = vmatprep.mubr.msk.f32.mxu0 %vm3326_vm1, %v3325_v2 }
 0x733   :  { %v3695_v51 = vpop.permute.xlu1 %1060 }
 0x734   :  { %v1063_v52 = vmul.f32 %v3695_v51, %v1059_v50 }
 0x736   :  { %1065 = vrot.lane.b32.xlu0 %v1063_v52, %s3328_s23 }
 0x7a8   :  { %v1066_v56 = vpop.permute.xlu0 %1065 }
 0x7a9   :  { %v3700_v27 = vadd.f32 %v1066_v56, %v1058_v55 }
 0x7ab   :  { %1078 = vrot.lane.b32.xlu0 %v3700_v27, %s3324_s28  ;;  %v1069_v60 = vsel %vm47_vm3, %v3700_v27, 0.0 }
 0x7ac   :  { %v1070_v29 = vrot.slane %v1069_v60, 4 }
 0x7ae   :  { %v1071_v31 = vadd.f32 %v1070_v29, %v1069_v60 }
 0x7b0   :  { %v1072_v32 = vrot.slane %v1071_v31, 2 }
 0x7b2   :  { %v1073_v11 = vadd.f32 %v1072_v32, %v1071_v31 }
 0x7b4   :  { %v1074_v34 = vrot.slane %v1073_v11, 1 }
 0x7b6   :  { %v1075_v12 = vadd.f32 %v1074_v34, %v1073_v11 }
 0x7b8   :  { %v1076_v39 = vmul.f32 0.125, %v1075_v12 }
 0x7ba   :  { %1194 = vrot.lane.b32.xlu0 %v1076_v39, %s3324_s28 }
 0x7c8   :  { %v3090_v23 = vpop.f32.mrf.mxu0 }
 0x7ca   :  { %v986_v42 = vpop.f32.mrf.mxu0 }
 0x7cb   :  { %v1025_v46 = vmul.f32 0.01, %v986_v42 }
 0x7d0   :  { %v3093_v16 = vpop.f32.mrf.mxu0 }
 0x7d2   :  { %v996_v6 = vpop.f32.mrf.mxu0 }
 0x7d8   :  { %v3096_v0 = vpop.f32.mrf.mxu0 }
 0x7d9   :  { %v1030_v20 = vmul.f32 0.01, %v3096_v0 }
 0x7da   :  { %v1006_v7 = vpop.f32.mrf.mxu0 }
 0x7db   :  { %v1038_v28 = vadd.f32 %v1030_v20, %v3608_v59  ;;  %v1029_v33 = vmul.f32 0.01, %v1006_v7  ;;  %v1027_v59 = vmul.f32 0.01, %v996_v6 }
 0x7dd   :  { %v3721_v37 = vmul.f32 0.99, %v1038_v28  ;;  %v1037_v5 = vadd.f32 %v1029_v33, %v3623_v63  ;;  %v1035_v44 = vadd.f32 %v1027_v59, %v3643_v14  ;;  %v1033_v14 = vadd.f32 %v1025_v46, %v3662_v40 }
 0x7de   :  { %v1394_v28 = vsub.f32 1.0, %v3700_v27 }
 0x7df   :  { %v3734_v43 = vadd.f32 %v3721_v37, %v3621_v62  ;;  %v3736_v8 = vmul.f32 0.99, %v1037_v5  ;;  %v3756_v47 = vmul.f32 0.99, %v1035_v44 }
 0x7e0   :  { %v3099_v17 = vpop.f32.mrf.mxu0 }
 0x7e1   :  { %v1032_v18 = vmul.f32 0.01, %v3099_v17  ;;  %v3766_v48 = vadd.f32 %v3756_v47, %v3653_v15 }
 0x7e2   :  { %v1016_v19 = vpop.f32.mrf.mxu0 }
 0x7e3   :  { %v1040_v22 = vadd.f32 %v1032_v18, %v3595_v53  ;;  %v1031_v24 = vmul.f32 0.01, %v1016_v19  ;;  %v1028_v53 = vmul.f32 0.01, %v3093_v16 }
 0x7e5   :  { %v3708_v25 = vmul.f32 0.99, %v1040_v22  ;;  %v1039_v26 = vadd.f32 %v1031_v24, %v3603_v58 }
 0x7e7   :  { %v3714_v1 = vadd.f32 %v3708_v25, %v3601_v57  ;;  %v3716_v36 = vmul.f32 0.99, %v1039_v26  ;;  %v1036_v57 = vadd.f32 %v1028_v53, %v3628_v35  ;;  %v3746_v35 = vadd.f32 %v3736_v8, %v3633_v3 }
 0x7e9   :  { %3101 = vmatpush3.xpose.msk.msra.mxu0 %vm67_vm0, %v3714_v1  ;;  %v3726_v58 = vadd.f32 %v3716_v36, %v3613_v30  ;;  %v1026_v30 = vmul.f32 0.01, %v3090_v23  ;;  %v3741_v63 = vmul.f32 0.99, %v1036_v57 }
 0x7ea   :  { %3102 = vmatprep.subr.mxu0 %v3325_v2 }
 0x7eb   :  { %v1034_v62 = vadd.f32 %v1026_v30, %v3648_v4  ;;  %v3754_v9 = vadd.f32 %v3741_v63, %v3641_v13  ;;  %v3775_v4 = vmul.f32 0.99, %v1033_v14 }
 0x7ed   :  { %3103 = vmatpush3.xpose.msk.msra.mxu0 %vm67_vm0, %v3726_v58  ;;  %v3761_v3 = vmul.f32 0.99, %v1034_v62  ;;  %v3782_v15 = vadd.f32 %v3775_v4, %v3669_v41 }
 0x7ee   :  { %3104 = vmatprep.subr.mxu0 %v3325_v2 }
 0x7ef   :  { %v3773_v13 = vadd.f32 %v3761_v3, %v3660_v38 }
 0x7f1   :  { %3105 = vmatpush3.xpose.msk.msra.mxu0 %vm67_vm0, %v3734_v43 }
 0x7f2   :  { %3106 = vmatprep.subr.mxu0 %v3325_v2 }
 0x7f5   :  { %3107 = vmatpush3.xpose.msk.msra.mxu0 %vm67_vm0, %v3746_v35 }
 0x7f6   :  { %3108 = vmatprep.subr.mxu0 %v3325_v2 }
 0x7f9   :  { %3109 = vmatpush3.xpose.msk.msra.mxu0 %vm67_vm0, %v3754_v9 }
 0x7fa   :  { %3110 = vmatprep.subr.mxu0 %v3325_v2 }
 0x7fd   :  { %3111 = vmatpush3.xpose.msk.msra.mxu0 %vm67_vm0, %v3766_v48 }
 0x7fe   :  { %3112 = vmatprep.subr.mxu0 %v3325_v2 }
 0x801   :  { %3113 = vmatpush3.xpose.msk.msra.mxu0 %vm67_vm0, %v3773_v13 }
 0x802   :  { %3114 = vmatprep.subr.mxu0 %v3325_v2 }
 0x805   :  { %3115 = vmatpush3.xpose.msk.msra.mxu0 %vm67_vm0, %v3782_v15 }
 0x81d   :  { %v1079_v40 = vpop.permute.xlu0 %1078 }
 0x81e   :  { %v1081_v49 = vsel %vm27_vm2, %v3447_v10, %v1079_v40 }
 0x81f   :  { %3117 = vmatmul.mubr.msk.f32.vlgmr.msra.gmra.mxu0 %vm67_vm0, %v1081_v49 }
 0x82c   :  { %v1195_v38 = vpop.permute.xlu0 %1194 }
 0x82d   :  { %v1197_v50 = vsel %vm27_vm2, %v3464_v45, %v1195_v38 }
 0x82e   :  { %3119 = vmatprep.subr.msk.mxu1 %vm242_vm5, %v1197_v50 }
 0x82f   :  { %3120 = vmatpush3.msk.msra.mxu1 %vm242_vm5, %v1197_v50 }
 0x830   :  { %3133 = vmatprep.subr.mxu1 %v3325_v2 }
 0x8df   :  { %v1175_v41 = vpop.f32.mrf.mxu0 }
 0x8e0   :  { %v1176_v52 = vadd.f32 %v3458_v21, %v1175_v41 }
 0x8e1   :  { %v3118_v54 = vpop.f32.mrf.mxu0 }
 0x8e2   :  { %v2753_v55 = vmul.f32 -1.442695, %v1176_v52 }
 0x8e4   :  { %3280 = vpow2.f32 %v2753_v55 }
 0x8f1   :  { %v3281_v56 = vpop.eup %3280 }
 0x8f2   :  { %v1182_v60 = vadd.f32 1.0, %v3281_v56 }
 0x8f4   :  { %3282 = vrcp.f32 %v1182_v60 }
 0x901   :  { %v3283_v29 = vpop.eup %3282 }
 0x902   :  { %v1185_v31 = vsel %vm171_vm4, %v3283_v29, 0.0  ;;  %v1396_v22 = vsub.f32 1.0, %v3283_v29  ;;  %v1395_v33 = vmul.f32 %v3283_v29, %v1394_v28 }
 0x903   :  { %v1186_v32 = vrot.slane %v1185_v31, 4 }
 0x905   :  { %v1187_v11 = vadd.f32 %v1186_v32, %v1185_v31 }
 0x907   :  { %v1188_v34 = vrot.slane %v1187_v11, 2 }
 0x909   :  { %v1189_v12 = vadd.f32 %v1188_v34, %v1187_v11 }
 0x90b   :  { %v1190_v39 = vrot.slane %v1189_v12, 1 }
 0x90d   :  { %v1191_v23 = vadd.f32 %v1190_v39, %v1189_v12 }
 0x90f   :  { %v1192_v42 = vmul.f32 0.125, %v1191_v23 }
 0x911   :  { %1198 = vxpose.xlu0.b32.start.end [1/1] (short) (narrow) %v1192_v42, 64 }
 0x956   :  { %1397 = vrot.lane.b32.xlu0 %v3700_v27, %s3327_s22 }
 0x98d   :  { %v1214_v16 = vpop.trf.xlu0 }
 0x98e   :  { %3121 = vmatprep.mubr.msk.f32.mxu1 %vm217_vm6, %v1214_v16 }
 0x991   :  { %v1215_v6 = vpop.trf.xlu0 }
 0x992   :  { %3122 = vmatmul.mubr.msk.f32.vlgmr.msra.gmra.mxu1 %vm217_vm6, %v1215_v6 }
 0x995   :  { %v1216_v0 = vpop.trf.xlu0 }
 0x996   :  { %3124 = vmatprep.mubr.msk.f32.mxu1 %vm217_vm6, %v1216_v0 }
 0x999   :  { %v1217_v7 = vpop.trf.xlu0 }
 0x99a   :  { %3125 = vmatmul.mubr.msk.f32.gmra.mxu1 %vm217_vm6, %v1217_v7 }
 0x99d   :  { %v1218_v17 = vpop.trf.xlu0 }
 0x99e   :  { %3127 = vmatprep.mubr.msk.f32.mxu1 %vm217_vm6, %v1218_v17 }
 0x9a1   :  { %v1219_v18 = vpop.trf.xlu0 }
 0x9a2   :  { %3128 = vmatmul.mubr.msk.f32.gmra.mxu1 %vm217_vm6, %v1219_v18 }
 0x9a5   :  { %v1220_v19 = vpop.trf.xlu0 }
 0x9a6   :  { %3130 = vmatprep.mubr.msk.f32.mxu1 %vm217_vm6, %v1220_v19 }
 0x9a9   :  { %v1221_v20 = vpop.trf.xlu0 }
 0x9aa   :  { %3131 = vmatmul.mubr.msk.f32.gmra.mxu1 %vm217_vm6, %v1221_v20 }
 0x9ab   :  { %3149 = vmatprep.mubr.msk.f32.mxu1 %vm3326_vm1, %v3325_v2 }
 0x9c8   :  { %v1398_v24 = vpop.permute.xlu0 %1397 }
 0x9c9   :  { %v1400_v26 = vmul.f32 %v1398_v24, %v1396_v22 }
 0x9cb   :  { %1402 = vrot.lane.b32.xlu1 %v1400_v26, %s3328_s23 }
 0xa3d   :  { %v1403_v53 = vpop.permute.xlu1 %1402 }
 0xa3e   :  { %v3810_v5 = vadd.f32 %v1403_v53, %v1395_v33 }
 0xa40   :  { %1415 = vrot.lane.b32.xlu1 %v3810_v5, %s3324_s28  ;;  %v1406_v57 = vsel %vm47_vm3, %v3810_v5, 0.0 }
 0xa41   :  { %v1407_v59 = vrot.slane %v1406_v57, 4 }
 0xa43   :  { %v1408_v30 = vadd.f32 %v1407_v59, %v1406_v57 }
 0xa45   :  { %v1409_v44 = vrot.slane %v1408_v30, 2 }
 0xa47   :  { %v1410_v62 = vadd.f32 %v1409_v44, %v1408_v30 }
 0xa49   :  { %v1411_v46 = vrot.slane %v1410_v62, 1 }
 0xa4b   :  { %v1412_v14 = vadd.f32 %v1411_v46, %v1410_v62 }
 0xa4d   :  { %v1413_v40 = vmul.f32 0.125, %v1412_v14 }
 0xa4f   :  { %1531 = vrot.lane.b32.xlu1 %v1413_v40, %s3324_s28 }
 0xa52   :  { %v3123_v49 = vpop.f32.mrf.mxu1 }
 0xa54   :  { %v1323_v38 = vpop.f32.mrf.mxu1 }
 0xa55   :  { %v1362_v18 = vmul.f32 0.01, %v1323_v38 }
 0xa5a   :  { %v3126_v50 = vpop.f32.mrf.mxu1 }
 0xa5c   :  { %v1333_v41 = vpop.f32.mrf.mxu1 }
 0xa62   :  { %v3129_v52 = vpop.f32.mrf.mxu1 }
 0xa63   :  { %v1367_v29 = vmul.f32 0.01, %v3129_v52 }
 0xa64   :  { %v1343_v54 = vpop.f32.mrf.mxu1 }
 0xa65   :  { %v1375_v12 = vadd.f32 %v1367_v29, %v3721_v37  ;;  %v1366_v39 = vmul.f32 0.01, %v1343_v54  ;;  %v1364_v37 = vmul.f32 0.01, %v1333_v41 }
 0xa67   :  { %v3831_v16 = vmul.f32 0.99, %v1375_v12  ;;  %v1374_v6 = vadd.f32 %v1366_v39, %v3736_v8  ;;  %v1372_v17 = vadd.f32 %v1364_v37, %v3756_v47  ;;  %v1370_v47 = vadd.f32 %v1362_v18, %v3775_v4 }
 0xa69   :  { %v3844_v0 = vadd.f32 %v3831_v16, %v3734_v43  ;;  %v3846_v7 = vmul.f32 0.99, %v1374_v6  ;;  %v3866_v20 = vmul.f32 0.99, %v1372_v17 }
 0xa6a   :  { %v3132_v55 = vpop.f32.mrf.mxu1 }
 0xa6b   :  { %v1369_v56 = vmul.f32 0.01, %v3132_v55  ;;  %v3876_v22 = vadd.f32 %v3866_v20, %v3766_v48 }
 0xa6c   :  { %v1353_v60 = vpop.f32.mrf.mxu1 }
 0xa6d   :  { %v1377_v31 = vadd.f32 %v1369_v56, %v3708_v25  ;;  %v1368_v32 = vmul.f32 0.01, %v1353_v60  ;;  %v1365_v25 = vmul.f32 0.01, %v3126_v50 }
 0xa6f   :  { %v3818_v11 = vmul.f32 0.99, %v1377_v31  ;;  %v1376_v34 = vadd.f32 %v1368_v32, %v3716_v36 }
 0xa71   :  { %v3824_v23 = vadd.f32 %v3818_v11, %v3714_v1  ;;  %v3826_v42 = vmul.f32 0.99, %v1376_v34  ;;  %v1373_v1 = vadd.f32 %v1365_v25, %v3741_v63  ;;  %v3856_v63 = vadd.f32 %v3846_v7, %v3746_v35 }
 0xa72   :  { %v1731_v34 = vsub.f32 1.0, %v3810_v5 }
 0xa73   :  { %3134 = vmatpush3.xpose.msk.msra.mxu1 %vm67_vm0, %v3824_v23  ;;  %v3836_v36 = vadd.f32 %v3826_v42, %v3726_v58  ;;  %v1363_v58 = vmul.f32 0.01, %v3123_v49  ;;  %v3851_v8 = vmul.f32 0.99, %v1373_v1 }
 0xa74   :  { %3135 = vmatprep.subr.mxu1 %v3325_v2 }
 0xa75   :  { %v1371_v43 = vadd.f32 %v1363_v58, %v3761_v3  ;;  %v3864_v19 = vadd.f32 %v3851_v8, %v3754_v9  ;;  %v3885_v3 = vmul.f32 0.99, %v1370_v47 }
 0xa77   :  { %3136 = vmatpush3.xpose.msk.msra.mxu1 %vm67_vm0, %v3836_v36  ;;  %v3871_v35 = vmul.f32 0.99, %v1371_v43  ;;  %v3892_v48 = vadd.f32 %v3885_v3, %v3782_v15 }
 0xa78   :  { %3137 = vmatprep.subr.mxu1 %v3325_v2 }
 0xa79   :  { %v3883_v9 = vadd.f32 %v3871_v35, %v3773_v13 }
 0xa7b   :  { %3138 = vmatpush3.xpose.msk.msra.mxu1 %vm67_vm0, %v3844_v0 }
 0xa7c   :  { %3139 = vmatprep.subr.mxu1 %v3325_v2 }
 0xa7f   :  { %3140 = vmatpush3.xpose.msk.msra.mxu1 %vm67_vm0, %v3856_v63 }
 0xa80   :  { %3141 = vmatprep.subr.mxu1 %v3325_v2 }
 0xa83   :  { %3142 = vmatpush3.xpose.msk.msra.mxu1 %vm67_vm0, %v3864_v19 }
 0xa84   :  { %3143 = vmatprep.subr.mxu1 %v3325_v2 }
 0xa87   :  { %3144 = vmatpush3.xpose.msk.msra.mxu1 %vm67_vm0, %v3876_v22 }
 0xa88   :  { %3145 = vmatprep.subr.mxu1 %v3325_v2 }
 0xa8b   :  { %3146 = vmatpush3.xpose.msk.msra.mxu1 %vm67_vm0, %v3883_v9 }
 0xa8c   :  { %3147 = vmatprep.subr.mxu1 %v3325_v2 }
 0xa8f   :  { %3148 = vmatpush3.xpose.msk.msra.mxu1 %vm67_vm0, %v3892_v48 }
 0xab2   :  { %v1416_v4 = vpop.permute.xlu1 %1415 }
 0xab3   :  { %v1418_v24 = vsel %vm27_vm2, %v3447_v10, %v1416_v4 }
 0xab4   :  { %3150 = vmatmul.mubr.msk.f32.vlgmr.msra.gmra.mxu1 %vm67_vm0, %v1418_v24 }
 0xac1   :  { %v1532_v13 = vpop.permute.xlu1 %1531 }
 0xac2   :  { %v1534_v26 = vsel %vm27_vm2, %v3464_v45, %v1532_v13 }
 0xac3   :  { %3152 = vmatprep.subr.msk.mxu0 %vm242_vm5, %v1534_v26 }
 0xac4   :  { %3153 = vmatpush3.msk.msra.mxu0 %vm242_vm5, %v1534_v26 }
 0xac5   :  { %3166 = vmatprep.subr.mxu0 %v3325_v2 }
 0xb74   :  { %v1512_v15 = vpop.f32.mrf.mxu1 }
 0xb75   :  { %v1513_v28 = vadd.f32 %v3458_v21, %v1512_v15 }
 0xb76   :  { %v3151_v33 = vpop.f32.mrf.mxu1 }
 0xb77   :  { %v2772_v53 = vmul.f32 -1.442695, %v1513_v28 }
 0xb79   :  { %3284 = vpow2.f32 %v2772_v53 }
 0xb86   :  { %v3285_v57 = vpop.eup %3284 }
 0xb87   :  { %v1519_v10 = vadd.f32 1.0, %v3285_v57 }
 0xb89   :  { %3286 = vrcp.f32 %v1519_v10 }
 0xb96   :  { %v3287_v59 = vpop.eup %3286 }
 0xb97   :  { %v1522_v30 = vsel %vm171_vm4, %v3287_v59, 0.0  ;;  %v1733_v29 = vsub.f32 1.0, %v3287_v59  ;;  %v1732_v12 = vmul.f32 %v3287_v59, %v1731_v34  ;;  %v4022_v34 = vld [vmem:[%s4317_s3] ss:$0 sm:$0xff] }
 0xb98   :  { %v1523_v44 = vrot.slane %v1522_v30, 4 }
 0xb9a   :  { %v1524_v62 = vadd.f32 %v1523_v44, %v1522_v30 }
 0xb9c   :  { %v1525_v46 = vrot.slane %v1524_v62, 2 }
 0xb9e   :  { %v1526_v14 = vadd.f32 %v1525_v46, %v1524_v62 }
 0xba0   :  { %v1527_v40 = vrot.slane %v1526_v14, 1 }
 0xba2   :  { %v1528_v49 = vadd.f32 %v1527_v40, %v1526_v14 }
 0xba4   :  { %v1529_v38 = vmul.f32 0.125, %v1528_v49 }
 0xba6   :  { %1535 = vxpose.xlu1.b32.start.end [1/1] (short) (narrow) %v1529_v38, 64 }
 0xbe0   :  { %1734 = vrot.lane.b32.xlu1 %v3810_v5, %s3327_s22 }
 0xc22   :  { %v1551_v21 = vpop.trf.xlu1 }
 0xc23   :  { %3154 = vmatprep.mubr.msk.f32.mxu0 %vm217_vm6, %v1551_v21 }
 0xc26   :  { %v1552_v50 = vpop.trf.xlu1 }
 0xc27   :  { %3155 = vmatmul.mubr.msk.f32.vlgmr.msra.gmra.mxu0 %vm217_vm6, %v1552_v50 }
 0xc2a   :  { %v1553_v41 = vpop.trf.xlu1 }
 0xc2b   :  { %3157 = vmatprep.mubr.msk.f32.mxu0 %vm217_vm6, %v1553_v41 }
 0xc2e   :  { %v1554_v52 = vpop.trf.xlu1 }
 0xc2f   :  { %3158 = vmatmul.mubr.msk.f32.gmra.mxu0 %vm217_vm6, %v1554_v52 }
 0xc32   :  { %v1555_v54 = vpop.trf.xlu1 }
 0xc33   :  { %3160 = vmatprep.mubr.msk.f32.mxu0 %vm217_vm6, %v1555_v54 }
 0xc36   :  { %v1556_v55 = vpop.trf.xlu1 }
 0xc37   :  { %3161 = vmatmul.mubr.msk.f32.gmra.mxu0 %vm217_vm6, %v1556_v55 }
 0xc3a   :  { %v1557_v56 = vpop.trf.xlu1 }
 0xc3b   :  { %3163 = vmatprep.mubr.msk.f32.mxu0 %vm217_vm6, %v1557_v56 }
 0xc3e   :  { %v1558_v60 = vpop.trf.xlu1 }
 0xc3f   :  { %3164 = vmatmul.mubr.msk.f32.gmra.mxu0 %vm217_vm6, %v1558_v60 }
 0xc40   :  { %3182 = vmatprep.mubr.msk.f32.mxu0 %vm3326_vm1, %v3325_v2 }
 0xc52   :  { %v1735_v31 = vpop.permute.xlu1 %1734 }
 0xc53   :  { %v1737_v32 = vmul.f32 %v1735_v31, %v1733_v29 }
 0xc55   :  { %1739 = vrot.lane.b32.xlu0 %v1737_v32, %s3328_s23 }
 0xcc7   :  { %v1740_v39 = vpop.permute.xlu0 %1739 }
 0xcc8   :  { %v3920_v25 = vadd.f32 %v1740_v39, %v1732_v12 }
 0xcca   :  { %1752 = vrot.lane.b32.xlu0 %v3920_v25, %s3324_s28  ;;  %v1743_v6 = vsel %vm47_vm3, %v3920_v25, 0.0 }
 0xccb   :  { %v1744_v1 = vrot.slane %v1743_v6, 4 }
 0xccd   :  { %v1745_v37 = vadd.f32 %v1744_v1, %v1743_v6 }
 0xccf   :  { %v1746_v58 = vrot.slane %v1745_v37, 2 }
 0xcd1   :  { %v1747_v17 = vadd.f32 %v1746_v58, %v1745_v37 }
 0xcd3   :  { %v1748_v43 = vrot.slane %v1747_v17, 1 }
 0xcd5   :  { %v1749_v18 = vadd.f32 %v1748_v43, %v1747_v17 }
 0xcd7   :  { %v1750_v47 = vmul.f32 0.125, %v1749_v18 }
 0xcd9   :  { %1868 = vrot.lane.b32.xlu0 %v1750_v47, %s3324_s28 }
 0xce7   :  { %v3156_v4 = vpop.f32.mrf.mxu0 }
 0xce9   :  { %v1660_v24 = vpop.f32.mrf.mxu0 }
 0xcea   :  { %v1699_v54 = vmul.f32 0.01, %v1660_v24 }
 0xcef   :  { %v3159_v13 = vpop.f32.mrf.mxu0 }
 0xcf1   :  { %v1670_v26 = vpop.f32.mrf.mxu0 }
 0xcf7   :  { %v3162_v15 = vpop.f32.mrf.mxu0 }
 0xcf8   :  { %v1704_v10 = vmul.f32 0.01, %v3162_v15 }
 0xcf9   :  { %v1680_v28 = vpop.f32.mrf.mxu0 }
 0xcfa   :  { %v1712_v46 = vadd.f32 %v1704_v10, %v3831_v16  ;;  %v1703_v14 = vmul.f32 0.01, %v1680_v28  ;;  %v1701_v16 = vmul.f32 0.01, %v1670_v26 }
 0xcfc   :  { %v3941_v38 = vmul.f32 0.99, %v1712_v46  ;;  %v1711_v21 = vadd.f32 %v1703_v14, %v3846_v7  ;;  %v1709_v52 = vadd.f32 %v1701_v16, %v3866_v20  ;;  %v1707_v20 = vadd.f32 %v1699_v54, %v3885_v3 }
 0xcfe   :  { %v3954_v50 = vadd.f32 %v3941_v38, %v3844_v0  ;;  %v3956_v41 = vmul.f32 0.99, %v1711_v21  ;;  %v3976_v56 = vmul.f32 0.99, %v1709_v52 }
 0xcff   :  { %v3165_v33 = vpop.f32.mrf.mxu0 }
 0xd00   :  { %v1706_v53 = vmul.f32 0.01, %v3165_v33  ;;  %v3986_v60 = vadd.f32 %v3976_v56, %v3876_v22 }
 0xd01   :  { %v1690_v57 = vpop.f32.mrf.mxu0 }
 0xd02   :  { %v1714_v59 = vadd.f32 %v1706_v53, %v3818_v11  ;;  %v1705_v30 = vmul.f32 0.01, %v1690_v57  ;;  %v1702_v11 = vmul.f32 0.01, %v3159_v13 }
 0xd04   :  { %v3928_v44 = vmul.f32 0.99, %v1714_v59  ;;  %v1713_v62 = vadd.f32 %v1705_v30, %v3826_v42 }
 0xd06   :  { %v3934_v40 = vadd.f32 %v3928_v44, %v3824_v23  ;;  %v3936_v49 = vmul.f32 0.99, %v1713_v62  ;;  %v1710_v23 = vadd.f32 %v1702_v11, %v3851_v8  ;;  %v3966_v8 = vadd.f32 %v3956_v41, %v3856_v63 }
 0xd07   :  { %v2068_v11 = vsub.f32 1.0, %v3920_v25 }
 0xd08   :  { %3167 = vmatpush3.xpose.msk.msra.mxu0 %vm67_vm0, %v3934_v40  ;;  %v3946_v42 = vadd.f32 %v3936_v49, %v3836_v36  ;;  %v1700_v36 = vmul.f32 0.01, %v3156_v4  ;;  %v3961_v7 = vmul.f32 0.99, %v1710_v23 }
 0xd09   :  { %3168 = vmatprep.subr.mxu0 %v3325_v2 }
 0xd0a   :  { %v1708_v0 = vadd.f32 %v1700_v36, %v3871_v35  ;;  %v3974_v55 = vadd.f32 %v3961_v7, %v3864_v19  ;;  %v3995_v35 = vmul.f32 0.99, %v1707_v20 }
 0xd0c   :  { %3169 = vmatpush3.xpose.msk.msra.mxu0 %vm67_vm0, %v3946_v42  ;;  %v3981_v63 = vmul.f32 0.99, %v1708_v0  ;;  %v4002_v22 = vadd.f32 %v3995_v35, %v3892_v48 }
 0xd0d   :  { %3170 = vmatprep.subr.mxu0 %v3325_v2 }
 0xd0e   :  { %v3993_v19 = vadd.f32 %v3981_v63, %v3883_v9  ;;  %v4009_v9 = vld [vmem:[%s4314_s0] sm:$0xff] }
 0xd10   :  { %3171 = vmatpush3.xpose.msk.msra.mxu0 %vm67_vm0, %v3954_v50 }
 0xd11   :  { %3172 = vmatprep.subr.mxu0 %v3325_v2 }
 0xd14   :  { %3173 = vmatpush3.xpose.msk.msra.mxu0 %vm67_vm0, %v3966_v8 }
 0xd15   :  { %3174 = vmatprep.subr.mxu0 %v3325_v2 }
 0xd18   :  { %3175 = vmatpush3.xpose.msk.msra.mxu0 %vm67_vm0, %v3974_v55 }
 0xd19   :  { %3176 = vmatprep.subr.mxu0 %v3325_v2 }
 0xd1c   :  { %3177 = vmatpush3.xpose.msk.msra.mxu0 %vm67_vm0, %v3986_v60 }
 0xd1d   :  { %3178 = vmatprep.subr.mxu0 %v3325_v2 }
 0xd20   :  { %3179 = vmatpush3.xpose.msk.msra.mxu0 %vm67_vm0, %v3993_v19 }
 0xd21   :  { %3180 = vmatprep.subr.mxu0 %v3325_v2 }
 0xd24   :  { %3181 = vmatpush3.xpose.msk.msra.mxu0 %vm67_vm0, %v4002_v22 }
 0xd3c   :  { %v1753_v3 = vpop.permute.xlu0 %1752 }
 0xd3d   :  { %v1755_v29 = vsel %vm27_vm2, %v4009_v9, %v1753_v3 }
 0xd3e   :  { %3183 = vmatmul.mubr.msk.f32.vlgmr.msra.gmra.mxu0 %vm67_vm0, %v1755_v29 }
 0xd4b   :  { %v1869_v31 = vpop.permute.xlu0 %1868 }
 0xd4c   :  { %v1871_v32 = vsel %vm27_vm2, %v3464_v45, %v1869_v31 }
 0xd4d   :  { %3185 = vmatprep.subr.msk.mxu1 %vm242_vm5, %v1871_v32 }
 0xd4e   :  { %3186 = vmatpush3.msk.msra.mxu1 %vm242_vm5, %v1871_v32 }
 0xd4f   :  { %3199 = vmatprep.subr.mxu1 %v3325_v2 }
 0xdfe   :  { %v1849_v48 = vpop.f32.mrf.mxu0 }
 0xdff   :  { %v1850_v12 = vadd.f32 %v4022_v34, %v1849_v48 }
 0xe00   :  { %v3184_v39 = vpop.f32.mrf.mxu0 }
 0xe01   :  { %v2791_v6 = vmul.f32 -1.442695, %v1850_v12 }
 0xe03   :  { %3288 = vpow2.f32 %v2791_v6 }
 0xe10   :  { %v3289_v1 = vpop.eup %3288 }
 0xe11   :  { %v1856_v37 = vadd.f32 1.0, %v3289_v1 }
 0xe13   :  { %3290 = vrcp.f32 %v1856_v37 }
 0xe20   :  { %v3291_v58 = vpop.eup %3290 }
 0xe21   :  { %v1859_v17 = vsel %vm171_vm4, %v3291_v58, 0.0  ;;  %v2070_v62 = vsub.f32 1.0, %v3291_v58  ;;  %v2069_v21 = vmul.f32 %v3291_v58, %v2068_v11 }
 0xe22   :  { %v1860_v43 = vrot.slane %v1859_v17, 4 }
 0xe24   :  { %v1861_v18 = vadd.f32 %v1860_v43, %v1859_v17 }
 0xe26   :  { %v1862_v47 = vrot.slane %v1861_v18, 2 }
 0xe28   :  { %v1863_v4 = vadd.f32 %v1862_v47, %v1861_v18 }
 0xe2a   :  { %v1864_v24 = vrot.slane %v1863_v4, 1 }
 0xe2c   :  { %v1865_v13 = vadd.f32 %v1864_v24, %v1863_v4 }
 0xe2e   :  { %v1866_v26 = vmul.f32 0.125, %v1865_v13 }
 0xe30   :  { %1872 = vxpose.xlu0.b32.start.end [1/1] (short) (narrow) %v1866_v26, 64 }
 0xe75   :  { %2071 = vrot.lane.b32.xlu0 %v3920_v25, %s3327_s22 }
 0xeac   :  { %v1888_v15 = vpop.trf.xlu0 }
 0xead   :  { %3187 = vmatprep.mubr.msk.f32.mxu1 %vm217_vm6, %v1888_v15 }
 0xeb0   :  { %v1889_v28 = vpop.trf.xlu0 }
 0xeb1   :  { %3188 = vmatmul.mubr.msk.f32.vlgmr.msra.gmra.mxu1 %vm217_vm6, %v1889_v28 }
 0xeb4   :  { %v1890_v33 = vpop.trf.xlu0 }
 0xeb5   :  { %3190 = vmatprep.mubr.msk.f32.mxu1 %vm217_vm6, %v1890_v33 }
 0xeb8   :  { %v1891_v53 = vpop.trf.xlu0 }
 0xeb9   :  { %3191 = vmatmul.mubr.msk.f32.gmra.mxu1 %vm217_vm6, %v1891_v53 }
 0xebc   :  { %v1892_v57 = vpop.trf.xlu0 }
 0xebd   :  { %3193 = vmatprep.mubr.msk.f32.mxu1 %vm217_vm6, %v1892_v57 }
 0xec0   :  { %v1893_v10 = vpop.trf.xlu0 }
 0xec1   :  { %3194 = vmatmul.mubr.msk.f32.gmra.mxu1 %vm217_vm6, %v1893_v10 }
 0xec4   :  { %v1894_v59 = vpop.trf.xlu0 }
 0xec5   :  { %3196 = vmatprep.mubr.msk.f32.mxu1 %vm217_vm6, %v1894_v59 }
 0xec8   :  { %v1895_v30 = vpop.trf.xlu0 }
 0xec9   :  { %3197 = vmatmul.mubr.msk.f32.gmra.mxu1 %vm217_vm6, %v1895_v30 }
 0xeca   :  { %3215 = vmatprep.mubr.msk.f32.mxu1 %vm3326_vm1, %v3325_v2 }
 0xee7   :  { %v2072_v46 = vpop.permute.xlu0 %2071 }
 0xee8   :  { %v2074_v14 = vmul.f32 %v2072_v46, %v2070_v62 }
 0xeea   :  { %2076 = vrot.lane.b32.xlu1 %v2074_v14, %s3328_s23 }
 0xf5c   :  { %v2077_v23 = vpop.permute.xlu1 %2076 }
 0xf5d   :  { %v4040_v16 = vadd.f32 %v2077_v23, %v2069_v21 }
 0xf5f   :  { %v2080_v36 = vsel %vm47_vm3, %v4040_v16, 0.0  ;;  %2089 = vrot.lane.b32.xlu1 %v4040_v16, %s3324_s28 }
 0xf60   :  { %v2081_v52 = vrot.slane %v2080_v36, 4 }
 0xf62   :  { %v2082_v0 = vadd.f32 %v2081_v52, %v2080_v36 }
 0xf64   :  { %v2083_v54 = vrot.slane %v2082_v0, 2 }
 0xf66   :  { %v2084_v20 = vadd.f32 %v2083_v54, %v2082_v0 }
 0xf68   :  { %v2085_v3 = vrot.slane %v2084_v20, 1 }
 0xf6a   :  { %v2086_v29 = vadd.f32 %v2085_v3, %v2084_v20 }
 0xf6c   :  { %v2087_v31 = vmul.f32 0.125, %v2086_v29 }
 0xf6e   :  { %2205 = vrot.lane.b32.xlu1 %v2087_v31, %s3324_s28 }
 0xf71   :  { %v3189_v32 = vpop.f32.mrf.mxu1 }
 0xf73   :  { %v1997_v48 = vpop.f32.mrf.mxu1 }
 0xf74   :  { %v2036_v30 = vmul.f32 0.01, %v1997_v48 }
 0xf79   :  { %v3192_v12 = vpop.f32.mrf.mxu1 }
 0xf7b   :  { %v2007_v39 = vpop.f32.mrf.mxu1 }
 0xf81   :  { %v3195_v6 = vpop.f32.mrf.mxu1 }
 0xf82   :  { %v2041_v43 = vmul.f32 0.01, %v3195_v6 }
 0xf83   :  { %v2017_v1 = vpop.f32.mrf.mxu1 }
 0xf84   :  { %v2049_v13 = vadd.f32 %v2041_v43, %v3941_v38  ;;  %v2040_v26 = vmul.f32 0.01, %v2017_v1  ;;  %v2038_v38 = vmul.f32 0.01, %v2007_v39 }
 0xf86   :  { %v4061_v33 = vmul.f32 0.99, %v2049_v13  ;;  %v2048_v53 = vadd.f32 %v2040_v26, %v3956_v41  ;;  %v2046_v59 = vadd.f32 %v2038_v38, %v3976_v56  ;;  %v2044_v56 = vadd.f32 %v2036_v30, %v3995_v35 }
 0xf88   :  { %v4074_v57 = vadd.f32 %v4061_v33, %v3954_v50  ;;  %v4076_v10 = vmul.f32 0.99, %v2048_v53  ;;  %v4096_v46 = vmul.f32 0.99, %v2046_v59 }
 0xf89   :  { %v3198_v37 = vpop.f32.mrf.mxu1 }
 0xf8a   :  { %v2043_v58 = vmul.f32 0.01, %v3198_v37  ;;  %v4106_v14 = vadd.f32 %v4096_v46, %v3986_v60 }
 0xf8b   :  { %v2027_v17 = vpop.f32.mrf.mxu1 }
 0xf8c   :  { %v2051_v18 = vadd.f32 %v2043_v58, %v3928_v44  ;;  %v2042_v47 = vmul.f32 0.01, %v2027_v17  ;;  %v2039_v44 = vmul.f32 0.01, %v3192_v12 }
 0xf8e   :  { %v4048_v4 = vmul.f32 0.99, %v2051_v18  ;;  %v2050_v24 = vadd.f32 %v2042_v47, %v3936_v49 }
 0xf90   :  { %v4054_v15 = vadd.f32 %v4048_v4, %v3934_v40  ;;  %v4056_v28 = vmul.f32 0.99, %v2050_v24  ;;  %v2047_v40 = vadd.f32 %v2039_v44, %v3961_v7  ;;  %v4086_v7 = vadd.f32 %v4076_v10, %v3966_v8 }
 0xf91   :  { %v2405_v44 = vsub.f32 1.0, %v4040_v16 }
 0xf92   :  { %3200 = vmatpush3.xpose.msk.msra.mxu1 %vm67_vm0, %v4054_v15  ;;  %v4066_v49 = vadd.f32 %v4056_v28, %v3946_v42  ;;  %v2037_v42 = vmul.f32 0.01, %v3189_v32  ;;  %v4081_v41 = vmul.f32 0.99, %v2047_v40 }
 0xf93   :  { %3201 = vmatprep.subr.mxu1 %v3325_v2 }
 0xf94   :  { %v2045_v50 = vadd.f32 %v2037_v42, %v3981_v63  ;;  %v4094_v62 = vadd.f32 %v4081_v41, %v3974_v55  ;;  %v4115_v63 = vmul.f32 0.99, %v2044_v56 }
 0xf96   :  { %3202 = vmatpush3.xpose.msk.msra.mxu1 %vm67_vm0, %v4066_v49  ;;  %v4101_v8 = vmul.f32 0.99, %v2045_v50  ;;  %v4122_v60 = vadd.f32 %v4115_v63, %v4002_v22 }
 0xf97   :  { %3203 = vmatprep.subr.mxu1 %v3325_v2 }
 0xf98   :  { %v4113_v55 = vadd.f32 %v4101_v8, %v3993_v19 }
 0xf9a   :  { %3204 = vmatpush3.xpose.msk.msra.mxu1 %vm67_vm0, %v4074_v57 }
 0xf9b   :  { %3205 = vmatprep.subr.mxu1 %v3325_v2 }
 0xf9e   :  { %3206 = vmatpush3.xpose.msk.msra.mxu1 %vm67_vm0, %v4086_v7 }
 0xf9f   :  { %3207 = vmatprep.subr.mxu1 %v3325_v2 }
 0xfa2   :  { %3208 = vmatpush3.xpose.msk.msra.mxu1 %vm67_vm0, %v4094_v62 }
 0xfa3   :  { %3209 = vmatprep.subr.mxu1 %v3325_v2 }
 0xfa6   :  { %3210 = vmatpush3.xpose.msk.msra.mxu1 %vm67_vm0, %v4106_v14 }
 0xfa7   :  { %3211 = vmatprep.subr.mxu1 %v3325_v2 }
 0xfaa   :  { %3212 = vmatpush3.xpose.msk.msra.mxu1 %vm67_vm0, %v4113_v55 }
 0xfab   :  { %3213 = vmatprep.subr.mxu1 %v3325_v2 }
 0xfae   :  { %3214 = vmatpush3.xpose.msk.msra.mxu1 %vm67_vm0, %v4122_v60 }
 0xfd1   :  { %v2090_v35 = vpop.permute.xlu1 %2089 }
 0xfd2   :  { %v2092_v11 = vsel %vm27_vm2, %v4009_v9, %v2090_v35 }
 0xfd3   :  { %3216 = vmatmul.mubr.msk.f32.vlgmr.msra.gmra.mxu1 %vm67_vm0, %v2092_v11 }
 0xfe0   :  { %v2206_v19 = vpop.permute.xlu1 %2205 }
 0xfe1   :  { %v2208_v21 = vsel %vm27_vm2, %v3464_v45, %v2206_v19 }
 0xfe2   :  { %3218 = vmatprep.subr.msk.mxu0 %vm242_vm5, %v2208_v21 }
 0xfe3   :  { %3219 = vmatpush3.msk.msra.mxu0 %vm242_vm5, %v2208_v21 }
 0xfe4   :  { %3232 = vmatprep.subr.mxu0 %v3325_v2 }
0x1093   :  { %v2186_v22 = vpop.f32.mrf.mxu1 }
0x1094   :  { %v2187_v23 = vadd.f32 %v4022_v34, %v2186_v22 }
0x1095   :  { %v3217_v36 = vpop.f32.mrf.mxu1 }
0x1096   :  { %v2810_v52 = vmul.f32 -1.442695, %v2187_v23 }
0x1098   :  { %3292 = vpow2.f32 %v2810_v52 }
0x10a5   :  { %v3293_v0 = vpop.eup %3292 }
0x10a6   :  { %v2193_v54 = vadd.f32 1.0, %v3293_v0 }
0x10a8   :  { %3294 = vrcp.f32 %v2193_v54 }
0x10b5   :  { %v3295_v20 = vpop.eup %3294 }
0x10b6   :  { %v2196_v3 = vsel %vm171_vm4, %v3295_v20, 0.0  ;;  %v2407_v24 = vsub.f32 1.0, %v3295_v20  ;;  %v2406_v53 = vmul.f32 %v3295_v20, %v2405_v44  ;;  %v2570_v44 = vld [vmem:[%s4318_s4 + $0x68] sm:$0xff] }
0x10b7   :  { %v2197_v29 = vrot.slane %v2196_v3, 4 }
0x10b9   :  { %v2198_v45 = vadd.f32 %v2197_v29, %v2196_v3 }
0x10bb   :  { %v2199_v31 = vrot.slane %v2198_v45, 2 }
0x10bd   :  { %v2200_v32 = vadd.f32 %v2199_v31, %v2198_v45 }
0x10bf   :  { %v2201_v48 = vrot.slane %v2200_v32, 1 }
0x10c1   :  { %v2202_v12 = vadd.f32 %v2201_v48, %v2200_v32 }
0x10c3   :  { %v2203_v39 = vmul.f32 0.125, %v2202_v12 }
0x10c5   :  { %2209 = vxpose.xlu1.b32.start.end [1/1] (short) (narrow) %v2203_v39, 64 }
0x10ff   :  { %2408 = vrot.lane.b32.xlu1 %v4040_v16, %s3327_s22 }
0x1141   :  { %v2225_v6 = vpop.trf.xlu1 }
0x1142   :  { %3220 = vmatprep.mubr.msk.f32.mxu0 %vm217_vm6, %v2225_v6 }
0x1145   :  { %v2226_v1 = vpop.trf.xlu1 }
0x1146   :  { %3221 = vmatmul.mubr.msk.f32.vlgmr.msra.gmra.mxu0 %vm217_vm6, %v2226_v1 }
0x1149   :  { %v2227_v37 = vpop.trf.xlu1 }
0x114a   :  { %3223 = vmatprep.mubr.msk.f32.mxu0 %vm217_vm6, %v2227_v37 }
0x114d   :  { %v2228_v58 = vpop.trf.xlu1 }
0x114e   :  { %3224 = vmatmul.mubr.msk.f32.gmra.mxu0 %vm217_vm6, %v2228_v58 }
0x1151   :  { %v2229_v17 = vpop.trf.xlu1 }
0x1152   :  { %3226 = vmatprep.mubr.msk.f32.mxu0 %vm217_vm6, %v2229_v17 }
0x1155   :  { %v2230_v43 = vpop.trf.xlu1 }
0x1156   :  { %3227 = vmatmul.mubr.msk.f32.gmra.mxu0 %vm217_vm6, %v2230_v43 }
0x1159   :  { %v2231_v18 = vpop.trf.xlu1 }
0x115a   :  { %3229 = vmatprep.mubr.msk.f32.mxu0 %vm217_vm6, %v2231_v18 }
0x115d   :  { %v2232_v47 = vpop.trf.xlu1 }
0x115e   :  { %3230 = vmatmul.mubr.msk.f32.gmra.mxu0 %vm217_vm6, %v2232_v47 }
0x115f   :  { %3248 = vmatprep.mubr.msk.f32.mxu0 %vm3326_vm1, %v3325_v2 }
0x1171   :  { %v4148_v13 = vpop.permute.xlu1 %2408 }
0x1172   :  { %v2411_v26 = vmul.f32 %v4148_v13, %v2407_v24  ;;  %v2586_v24 = vld [vmem:[%s4318_s4 + $0xe8] sm:$0xff] }
0x1174   :  { %2413 = vrot.lane.b32.xlu0 %v2411_v26, %s3328_s23 }
0x11e6   :  { %v2414_v40 = vpop.permute.xlu0 %2413 }
0x11e7   :  { %v4153_v38 = vadd.f32 %v2414_v40, %v2406_v53  ;;  %v2585_v40 = vld [vmem:[%s4318_s4 + $0xe0] sm:$0xff] }
0x11e9   :  { %2418 = vrot.lane.b32.xlu0 %v4153_v38, %s3324_s28  ;;  %v2525_v26 = vsub.f32 1.0, %v4153_v38 }
0x11ed   :  { %2528 = vrot.lane.b32.xlu0 %v4153_v38, %s3327_s22 }
0x1206   :  { %v3222_v42 = vpop.f32.mrf.mxu0 }
0x1207   :  { %v2374_v48 = vmul.f32 0.01, %v3222_v42 }
0x1208   :  { %v2334_v59 = vpop.f32.mrf.mxu0 }
0x1209   :  { %v2373_v39 = vmul.f32 0.01, %v2334_v59 }
0x120b   :  { %v2381_v37 = vadd.f32 %v2373_v39, %v4115_v63 }
0x120e   :  { %v3225_v50 = vpop.f32.mrf.mxu0 }
0x120f   :  { %v2376_v29 = vmul.f32 0.01, %v3225_v50  ;;  %v2569_v50 = vld [vmem:[%s4318_s4 + $0x60] sm:$0xff] }
0x1210   :  { %v2344_v30 = vpop.f32.mrf.mxu0 }
0x1216   :  { %v3228_v56 = vpop.f32.mrf.mxu0 }
0x1217   :  { %v2378_v16 = vmul.f32 0.01, %v3228_v56  ;;  %v2584_v56 = vld [vmem:[%s4318_s4 + $0xd8] sm:$0xff] }
0x1218   :  { %v2354_v35 = vpop.f32.mrf.mxu0 }
0x1219   :  { %v2386_v0 = vadd.f32 %v2378_v16, %v4061_v33  ;;  %v2377_v54 = vmul.f32 0.01, %v2354_v35  ;;  %v2375_v33 = vmul.f32 0.01, %v2344_v30  ;;  %v2582_v16 = vld [vmem:[%s4318_s4 + $0xc8] sm:$0xff] }
0x121b   :  { %v2394_v45 = vmul.f32 0.99, %v2386_v0  ;;  %v2385_v31 = vadd.f32 %v2377_v54, %v4076_v10  ;;  %v2383_v10 = vadd.f32 %v2375_v33, %v4096_v46  ;;  %v2579_v0 = vld [vmem:[%s4318_s4 + $0xb0] sm:$0xff] }
0x121c   :  { %v2563_v54 = vld [vmem:[%s4318_s4 + $0x30] sm:$0xff] }
0x121d   :  { %v2393_v32 = vmul.f32 0.99, %v2385_v31  ;;  %v2391_v6 = vmul.f32 0.99, %v2383_v10  ;;  %v2576_v31 = vld [vmem:[%s4318_s4 + $0x98] sm:$0xff]  ;;  %v2559_v33 = vld [vmem:[%s4318_s4 + $0x10] sm:$0xff] }
0x121e   :  { %v3231_v11 = vpop.f32.mrf.mxu0 }
0x121f   :  { %v2380_v19 = vmul.f32 0.01, %v3231_v11  ;;  %v2399_v46 = vadd.f32 %v2391_v6, %v4106_v14  ;;  %v2568_v11 = vld [vmem:[%s4318_s4 + $0x58] sm:$0xff] }
0x1220   :  { %v2364_v21 = vpop.f32.mrf.mxu0 }
0x1221   :  { %v2388_v22 = vadd.f32 %v2380_v19, %v4048_v4  ;;  %v2379_v23 = vmul.f32 0.01, %v2364_v21  ;;  %v2583_v19 = vld [vmem:[%s4318_s4 + $0xd0] sm:$0xff] }
0x1222   :  { %v2567_v21 = vld [vmem:[%s4318_s4 + $0x50] sm:$0xff] }
0x1223   :  { %v2396_v36 = vmul.f32 0.99, %v2388_v22  ;;  %v2387_v52 = vadd.f32 %v2379_v23, %v4056_v28  ;;  %v2384_v28 = vadd.f32 %v2376_v29, %v4081_v41  ;;  %v2382_v41 = vadd.f32 %v2374_v48, %v4101_v8  ;;  %v2566_v23 = vld [vmem:[%s4318_s4 + $0x48] sm:$0xff]  ;;  %v2577_v29 = vld [vmem:[%s4318_s4 + $0xa0] sm:$0xff] }
0x1224   :  { %v2389_v8 = vmul.f32 0.99, %v2381_v37  ;;  %v3258_v22 = vpack.i.bf16 %v3700_v27, %v4153_v38  ;;  %v2580_v27 = vld [vmem:[%s4318_s4 + $0xb8] sm:$0xff]  ;;  %v2573_v48 = vld [vmem:[%s4318_s4 + $0x80] sm:$0xff]  ;;  %v2550_v37 = vsel %vm47_vm3, %v3485_v61, %v3695_v51 }
0x1225   :  { %v2404_v20 = vadd.f32 %v2396_v36, %v4054_v15  ;;  %v2395_v3 = vmul.f32 0.99, %v2387_v52  ;;  %v2402_v15 = vadd.f32 %v2394_v45, %v4074_v57  ;;  %v2392_v12 = vmul.f32 0.99, %v2384_v28  ;;  %v2581_v36 = vld [vmem:[%s4318_s4 + $0xc0] sm:$0xff]  ;;  %v2564_v38 = vld [vmem:[%s4318_s4 + $0x38] sm:$0xff] }
0x1226   :  { %v2390_v1 = vmul.f32 0.99, %v2382_v41  ;;  %v2565_v52 = vld [vmem:[%s4318_s4 + $0x40] sm:$0xff]  ;;  %v2575_v28 = vld [vmem:[%s4318_s4 + $0x90] sm:$0xff] }
0x1227   :  { %3233 = vmatpush3.xpose.msk.msra.mxu0 %vm67_vm0, %v2404_v20  ;;  %v2403_v4 = vadd.f32 %v2395_v3, %v4066_v49  ;;  %v2401_v49 = vadd.f32 %v2393_v32, %v4086_v7  ;;  %v2400_v57 = vadd.f32 %v2392_v12, %v4094_v62  ;;  %v2397_v62 = vadd.f32 %v2389_v8, %v4122_v60  ;;  %v2572_v60 = vld [vmem:[%s4318_s4 + $0x78] sm:$0xff]  ;;  %v2578_v20 = vld [vmem:[%s4318_s4 + $0xa8] sm:$0xff]  ;;  %v2561_v45 = vld [vmem:[%s4318_s4 + $0x20] sm:$0xff] }
0x1228   :  { %3234 = vmatprep.subr.mxu0 %v3325_v2  ;;  %v2398_v7 = vadd.f32 %v2390_v1, %v4113_v55  ;;  %v2562_v3 = vld [vmem:[%s4318_s4 + $0x28] sm:$0xff]  ;;  %v2557_v12 = vld [vmem:[%s4318_s4] sm:$0xff] }
0x1229   :  { %v2558_v32 = vld [vmem:[%s4318_s4 + $0x8] sm:$0xff] }
0x122b   :  { %3235 = vmatpush3.xpose.msk.msra.mxu0 %vm67_vm0, %v2403_v4  ;;  %v2560_v4 = vld [vmem:[%s4318_s4 + $0x18] sm:$0xff] }
0x122c   :  { %3236 = vmatprep.subr.mxu0 %v3325_v2 }
0x122f   :  { %3237 = vmatpush3.xpose.msk.msra.mxu0 %vm67_vm0, %v2402_v15  ;;  %v2574_v15 = vld [vmem:[%s4318_s4 + $0x88] sm:$0xff] }
0x1230   :  { %3238 = vmatprep.subr.mxu0 %v3325_v2 }
0x1233   :  { %3239 = vmatpush3.xpose.msk.msra.mxu0 %vm67_vm0, %v2401_v49 }
0x1234   :  { %3240 = vmatprep.subr.mxu0 %v3325_v2 }
0x1237   :  { %3241 = vmatpush3.xpose.msk.msra.mxu0 %vm67_vm0, %v2400_v57 }
0x1238   :  { %3242 = vmatprep.subr.mxu0 %v3325_v2 }
0x123b   :  { %3243 = vmatpush3.xpose.msk.msra.mxu0 %vm67_vm0, %v2399_v46  ;;  %v2554_v46 = vsel %vm47_vm3, %v3920_v25, %v4148_v13 }
0x123c   :  { %3244 = vmatprep.subr.mxu0 %v3325_v2 }
0x123f   :  { %3245 = vmatpush3.xpose.msk.msra.mxu0 %vm67_vm0, %v2398_v7 }
0x1240   :  { %3246 = vmatprep.subr.mxu0 %v3325_v2  ;;  %v2588_v2 = vld [vmem:[%s4318_s4 + $0xf8] sm:$0xff] }
0x1241   :  { %2966 = vmatprep.subr.mxu1 %v2588_v2 }
0x1242   :  { %2967 = vmatpush3.msra.mxu1 %v2572_v60 }
0x1243   :  { %3247 = vmatpush3.xpose.msk.msra.mxu0 %vm67_vm0, %v2397_v62 }
0x125b   :  { %v2419_v58 = vpop.permute.xlu0 %2418 }
0x125c   :  { %v2421_v63 = vsel %vm27_vm2, %v4009_v9, %v2419_v58  ;;  %v2587_v9 = vld [vmem:[%s4318_s4 + $0xf0] sm:$0xff] }
0x125d   :  { %3249 = vmatmul.mubr.msk.f32.vlgmr.msra.gmra.mxu0 %vm67_vm0, %v2421_v63  ;;  %2968 = vmatprep.subr.mxu1 %v2587_v9 }
0x125f   :  { %v2529_v30 = vpop.permute.xlu0 %2528 }
0x131d   :  { %v2515_v14 = vpop.f32.mrf.mxu0 }
0x131e   :  { %v2516_v17 = vadd.f32 %v4022_v34, %v2515_v14  ;;  %v2571_v34 = vld [vmem:[%s4318_s4 + $0x70] sm:$0xff]  ;;  %s3330_s4 = smov [#allocation2]  }
0x131f   :  { %v3250_v43 = vpop.f32.mrf.mxu0  ;;  %2969 = vmatpush3.msra.mxu1 %v2571_v34 }
0x1320   :  { %v2829_v55 = vmul.f32 -1.442695, %v2516_v17  ;;  %2970 = vmatprep.subr.mxu1 %v2586_v24 }
0x1321   :  { %2971 = vmatpush3.msra.mxu1 %v2570_v44 }
0x1322   :  { %3296 = vpow2.f32 %v2829_v55  ;;  %2972 = vmatprep.subr.mxu1 %v2585_v40 }
0x1323   :  { %2973 = vmatpush3.msra.mxu1 %v2569_v50 }
0x1324   :  { %2974 = vmatprep.subr.mxu1 %v2584_v56 }
0x1325   :  { %2975 = vmatpush3.msra.mxu1 %v2568_v11 }
0x1326   :  { %2976 = vmatprep.subr.mxu1 %v2583_v19 }
0x1327   :  { %2977 = vmatpush3.msra.mxu1 %v2567_v21 }
0x1328   :  { %2978 = vmatprep.subr.mxu1 %v2582_v16 }
0x1329   :  { %2979 = vmatpush3.msra.mxu1 %v2566_v23 }
0x132a   :  { %2980 = vmatprep.subr.mxu1 %v2581_v36 }
0x132b   :  { %2981 = vmatpush3.msra.mxu1 %v2565_v52 }
0x132c   :  { %2982 = vmatprep.subr.mxu1 %v2580_v27 }
0x132d   :  { %2983 = vmatpush3.msra.mxu1 %v2564_v38 }
0x132e   :  { %2984 = vmatprep.subr.mxu1 %v2579_v0 }
0x132f   :  { %v3297_v18 = vpop.eup %3296  ;;  %2985 = vmatpush3.msra.mxu1 %v2563_v54 }
0x1330   :  { %v2522_v47 = vadd.f32 1.0, %v3297_v18  ;;  %2986 = vmatprep.subr.mxu1 %v2578_v20 }
0x1331   :  { %2987 = vmatpush3.msra.mxu1 %v2562_v3 }
0x1332   :  { %3298 = vrcp.f32 %v2522_v47  ;;  %2988 = vmatprep.subr.mxu1 %v2577_v29 }
0x1333   :  { %2989 = vmatpush3.msra.mxu1 %v2561_v45 }
0x1334   :  { %2990 = vmatprep.subr.mxu1 %v2576_v31 }
0x1335   :  { %2991 = vmatpush3.msra.mxu1 %v2560_v4 }
0x1336   :  { %2992 = vmatprep.subr.mxu1 %v2575_v28 }
0x1337   :  { %2993 = vmatpush3.msra.mxu1 %v2559_v33 }
0x1338   :  { %2994 = vmatprep.subr.mxu1 %v2574_v15 }
0x1339   :  { %2995 = vmatpush3.msra.mxu1 %v2558_v32 }
0x133a   :  { %2996 = vmatprep.subr.mxu1 %v2573_v48 }
0x133b   :  { %2997 = vmatpush3.msra.mxu1 %v2557_v12 }
0x133f   :  { %v3299_v53 = vpop.eup %3298 }
0x1340   :  { %v2527_v42 = vsub.f32 1.0, %v3299_v53  ;;  %v2526_v59 = vmul.f32 %v3299_v53, %v2525_v26 }
0x1342   :  { %v2531_v35 = vmul.f32 %v2529_v30, %v2527_v42 }
0x1344   :  { %2533 = vrot.lane.b32.xlu0 %v2531_v35, %s3328_s23 }
0x1348   :  { %3259 = vrot.lane.b32.xlu0 %v3258_v22, %s3329_s29 }
0x13b6   :  { %v2534_v10 = vpop.permute.xlu0 %2533 }
0x13b7   :  { %v2536_v49 = vadd.f32 %v2534_v10, %v2526_v59 }
0x13b9   :  { %v3263_v41 = vpack.i.bf16 %v3810_v5, %v2536_v49  ;;  %2667 = vst.msk [vmem:[#allocation2] sm:$0xff] %vm47_vm3, %v2536_v49 }
0x13ba   :  { %v3260_v39 = vpop.permute.xlu0 %3259 }
0x13bb   :  { %3264 = vrot.lane.b32.xlu0 %v3263_v41, %s3328_s23  ;;  %v3262_v57 = vunpack.i.h.bf16 %v3260_v39  ;;  %v3261_v6 = vunpack.i.l.bf16 %v3260_v39  ;;  %s2676_s23 = sshll.u32 %s3330_s4, 4  ;;  %s2677_s23 = int_to_ptr.vmem [resolvable:$true] %s2676_s23 }
0x13bc   :  { %s3302_s15 = scalar_lea.vmem %s2677_s23, 128  ;;  %p3307_p1 = scmp.lt.s32.totalorder %s2677_s23, %s2677_s23 }
0x13bd   :  { %v2555_v5 = vsel %vm171_vm4, %v2554_v46, %v3261_v6  ;;  %v2551_v62 = vsel %vm171_vm4, %v2550_v37, %v3262_v57  ;;  %p3303_p0 = scmp.ne.s32.totalorder %s2677_s23, %s3302_s15  ;;  %p3308_p2 = scmp.lt.s32.totalorder %s3302_s15, %s3302_s15 }
0x13bf   :  { %p3309_p3 = por %p3308_p2, %p3307_p1 }
0x13c1   :  { %p3310_p4 = pnand %p3309_p3, %p3303_p0 }
0x142d   :  { %v3265_v1 = vpop.permute.xlu0 %3264 }
0x142e   :  { %v3267_v7 = vunpack.i.h.bf16 %v3265_v1  ;;  %v3266_v8 = vunpack.i.l.bf16 %v3265_v1 }
0x1430   :  { %v2556_v58 = vsel %vm2552_vm7, %v2555_v5, %v3266_v8  ;;  %v2553_v63 = vsel %vm2552_vm7, %v2551_v62, %v3267_v7 }
0x1431   :  { %2660 = vmatprep.mubr.f32.mxu1 %v2556_v58 }
0x1432   :  { %2661 = vmatmul.mubr.f32.vlgmr.msra.gmra.mxu1 %v2553_v63 }
0x1433   :  { %3313 = shalt.err (!%p3310_p4)
}
0x1434   :  { %2679 = dma.vmem_to_hbm [thread:$0]  %s2677_s23, 128, %s4321_s7, [#allocation3]   ;;  %v2830_v51 = vld [vmem:[%s4319_s5] ss:$0 sm:$0xff] }
0x14f2   :  { %v2998_v61 = vpop.f32.mrf.mxu1 }
0x14f4   :  { %v2999_v25 = vpop.f32.mrf.mxu1 }
0x14f5   :  { %v3000_v13 = vadd.f32 %v2999_v25, %v2998_v61 }
0x14f7   :  { %v2663_v14 = vadd.f32 %v3000_v13, %v2830_v51 }
0x14f9   :  { %2666 = vst [vmem:[%s4320_s6] sm:$0xff] %v2663_v14 }
0x14fa   :  { %3322 = dma.done.wait [#allocation3], 128  }
0x14fb   :  { %3323 = vsyncadd [#allocation3], 4294967168 }
0x14fc   :  { %2685 = vsyncpa [#allocation3], 1 }

</bundles_post_ra>
